<compile_context>
chip_gen: v7x
topology: tpu7x:2x2x1
jax: 0.10.0
libtpu: 0.0.40
codegen_flags: <defaults>
</compile_context>

<pallas_src>
import jax
import jax.numpy as jnp
from jax import lax
from jax.experimental import pallas as pl
from jax.experimental.pallas import tpu as pltpu

NUM_CLASSES = 10
PADDED_CLASSES = 128          # lane-dense output width (one full vreg lane dim)
NEG_LARGE = -1e30             # mask value for padded logit columns
IN_FEATURES = 28 * 28
H1, H2 = 512, 256


def mlp_kernel(x_ref, w1_ref, b1_ref, w2_ref, b2_ref, w3_ref, b3_ref, o_ref):
    # fc1 (+ folded BN1) + relu.  bf16 operands on the MXU, f32 accumulate / elementwise.
    h = jnp.dot(x_ref[...], w1_ref[...], preferred_element_type=jnp.float32) + b1_ref[...]
    h = jnp.maximum(h, 0.0)
    # dropout (eval): identity

    # fc2 (+ folded BN2) + relu
    h = jnp.dot(h.astype(jnp.bfloat16), w2_ref[...],
                preferred_element_type=jnp.float32) + b2_ref[...]
    h = jnp.maximum(h, 0.0)
    # dropout (eval): identity

    # fc3 (padded to 128 cols) + masked log_softmax over the real 10 classes
    logits = jnp.dot(h.astype(jnp.bfloat16), w3_ref[...],
                     preferred_element_type=jnp.float32) + b3_ref[...]
    col = lax.broadcasted_iota(jnp.int32, logits.shape, 1)
    logits = jnp.where(col < NUM_CLASSES, logits, NEG_LARGE)
    m = jnp.max(logits, axis=-1, keepdims=True)
    z = logits - m
    lse = jnp.log(jnp.sum(jnp.exp(z), axis=-1, keepdims=True))
    o_ref[...] = z - lse


def _round_up(n, m):
    return (n + m - 1) // m * m


def net_forward(x_nchw, prepared, *, block_b=512):
    """block_b=512 is safe on v7x (32 MiB scoped VMEM); v6e/v5e can raise it to 1024+."""
    w1, b1, w2, b2, w3p, b3p = prepared
    B = x_nchw.shape[0]
    x = x_nchw.reshape(B, IN_FEATURES).astype(jnp.bfloat16)

    TB = min(block_b, _round_up(B, 8))          # sublane-aligned batch tile
    Bp = _round_up(B, TB)
    if Bp != B:
        x = jnp.pad(x, ((0, Bp - B), (0, 0)))   # zero rows; sliced off below

    grid = (Bp // TB,)
    batch_spec = pl.BlockSpec((TB, IN_FEATURES), lambda i: (i, 0))
    out_spec = pl.BlockSpec((TB, PADDED_CLASSES), lambda i: (i, 0))

    def resident(shape):
        # Same block index for every grid step -> stays VMEM-resident, no re-DMA.
        return pl.BlockSpec(shape, lambda i: (0, 0))

    flops = 2 * Bp * (IN_FEATURES * H1 + H1 * H2 + H2 * NUM_CLASSES)
    bytes_accessed = (
        Bp * IN_FEATURES * 2                                   # bf16 x stream
        + (w1.size + w2.size + w3p.size) * 2                   # bf16 weights
        + (b1.size + b2.size + b3p.size) * 4                   # f32 biases
        + Bp * PADDED_CLASSES * 4                              # f32 output
    )

    out = pl.pallas_call(
        mlp_kernel,
        out_shape=jax.ShapeDtypeStruct((Bp, PADDED_CLASSES), jnp.float32),
        grid=grid,
        in_specs=[
            batch_spec,
            resident((IN_FEATURES, H1)), resident((1, H1)),
            resident((H1, H2)), resident((1, H2)),
            resident((H2, PADDED_CLASSES)), resident((1, PADDED_CLASSES)),
        ],
        out_specs=out_spec,
        compiler_params=pltpu.CompilerParams(
            dimension_semantics=("parallel",),
        ),
        cost_estimate=pl.CostEstimate(
            flops=flops,
            transcendentals=Bp * PADDED_CLASSES,
            bytes_accessed=bytes_accessed,
        ),
    )(x, w1, b1, w2, b2, w3p, b3p)

    return out[:B, :NUM_CLASSES]


def make_params(key):
    """Deterministic parameter init (shapes from NET.__init__), PyTorch-style."""
    k1, k2, k3, k4, k5, k6 = jax.random.split(key, 6)

    def linear(kw, kb, fan_in, fan_out):
        bound = 1.0 / (fan_in ** 0.5)
        w = jax.random.uniform(kw, (fan_in, fan_out), jnp.float32, -bound, bound)
        b = jax.random.uniform(kb, (1, fan_out), jnp.float32, -bound, bound)
        return w, b

    w1, b1 = linear(k1, k2, IN_FEATURES, H1)
    w2, b2 = linear(k3, k4, H1, H2)
    w3, b3 = linear(k5, k6, H2, NUM_CLASSES)

    def bn(num_features):
        gamma = jnp.ones((1, num_features), jnp.float32)
        beta = jnp.zeros((1, num_features), jnp.float32)
        running_mean = jnp.zeros((1, num_features), jnp.float32)
        running_var = jnp.ones((1, num_features), jnp.float32)
        return gamma, beta, running_mean, running_var

    return dict(w1=w1, b1=b1, w2=w2, b2=b2, w3=w3, b3=b3, bn1=bn(H1), bn2=bn(H2))


def prepare_params(params, eps=1e-5):
    """Fold eval-mode BN into fc1/fc2, cast weights to bf16, pad fc3 to 128 lanes."""
    def fold(w, b, bn_params):
        gamma, beta, mean, var = bn_params
        scale = gamma / jnp.sqrt(var + eps)
        shift = beta - mean * scale
        return w * scale, b * scale + shift

    w1, b1 = fold(params["w1"], params["b1"], params["bn1"])
    w2, b2 = fold(params["w2"], params["b2"], params["bn2"])
    w3, b3 = params["w3"], params["b3"]

    w3p = jnp.zeros((H2, PADDED_CLASSES), jnp.float32).at[:, :NUM_CLASSES].set(w3)
    b3p = jnp.zeros((1, PADDED_CLASSES), jnp.float32).at[:, :NUM_CLASSES].set(b3)

    return (w1.astype(jnp.bfloat16), b1,
            w2.astype(jnp.bfloat16), b2,
            w3p.astype(jnp.bfloat16), b3p)


def net_forward_ref(x_nchw, prepared):
    """Plain-JAX reference mirroring the kernel's bf16 matmul operands (f32 accumulate)."""
    w1, b1, w2, b2, w3p, b3p = prepared
    f32 = jnp.float32
    x = x_nchw.reshape(x_nchw.shape[0], IN_FEATURES).astype(jnp.bfloat16).astype(f32)
    h = jnp.maximum(x @ w1.astype(f32) + b1, 0.0)
    h = jnp.maximum(h.astype(jnp.bfloat16).astype(f32) @ w2.astype(f32) + b2, 0.0)
    logits = (h.astype(jnp.bfloat16).astype(f32) @ w3p.astype(f32)[:, :NUM_CLASSES]
              + b3p[:, :NUM_CLASSES])
    return jax.nn.log_softmax(logits, axis=1)


if __name__ == "__main__":
    key = jax.random.PRNGKey(0)
    kx, kp = jax.random.split(key)

    B = 8  # small batch (not a multiple of the default tile -> exercises padding path)
    x = jax.random.normal(kx, (B, 1, 28, 28), jnp.float32)  # NCHW like PyTorch MNIST
    params = make_params(kp)
    prepared = prepare_params(params)

    out = net_forward(x, prepared)
    out = jax.block_until_ready(out)

    ref = net_forward_ref(x, prepared)
    assert out.shape == (B, NUM_CLASSES)
    assert bool(jnp.allclose(out, ref, atol=1e-2, rtol=1e-2)), \
        float(jnp.max(jnp.abs(out - ref)))

    print("KERNEL_OK")
</pallas_src>

<mosaic_0001>
module attributes {stable_mosaic.version = 11 : i64} {
  func.func @mlp_kernel(%arg0: i32, %arg1: memref<8x784xbf16, #tpu.memory_space<vmem>>, %arg2: memref<784x512xbf16, #tpu.memory_space<vmem>>, %arg3: memref<1x512xf32, #tpu.memory_space<vmem>>, %arg4: memref<512x256xbf16, #tpu.memory_space<vmem>>, %arg5: memref<1x256xf32, #tpu.memory_space<vmem>>, %arg6: memref<256x128xbf16, #tpu.memory_space<vmem>>, %arg7: memref<1x128xf32, #tpu.memory_space<vmem>>, %arg8: memref<8x128xf32, #tpu.memory_space<vmem>>) attributes {dimension_semantics = [#tpu.dimension_semantics<parallel>], iteration_bounds = array<i64: 1>, scalar_prefetch = 0 : i64, scratch_operands = 0 : i64, tpu.core_type = #tpu.core_type<tc>, window_params = [{transform_indices = @transform_0, window_bounds = array<i64: 8, 784>}, {pipeline_mode = #tpu.pipeline_mode<synchronous>, transform_indices = @transform_1, window_bounds = array<i64: 784, 512>}, {pipeline_mode = #tpu.pipeline_mode<synchronous>, transform_indices = @transform_2, window_bounds = array<i64: 1, 512>}, {pipeline_mode = #tpu.pipeline_mode<synchronous>, transform_indices = @transform_3, window_bounds = array<i64: 512, 256>}, {pipeline_mode = #tpu.pipeline_mode<synchronous>, transform_indices = @transform_4, window_bounds = array<i64: 1, 256>}, {pipeline_mode = #tpu.pipeline_mode<synchronous>, transform_indices = @transform_5, window_bounds = array<i64: 256, 128>}, {pipeline_mode = #tpu.pipeline_mode<synchronous>, transform_indices = @transform_6, window_bounds = array<i64: 1, 128>}, {transform_indices = @transform_7, window_bounds = array<i64: 8, 128>}]} {
    %c0 = arith.constant 0 : index
    %c0_0 = arith.constant 0 : index
    %0 = vector.load %arg1[%c0, %c0_0] : memref<8x784xbf16, #tpu.memory_space<vmem>>, vector<8x784xbf16>
    %c0_1 = arith.constant 0 : index
    %c0_2 = arith.constant 0 : index
    %1 = vector.load %arg2[%c0_1, %c0_2] : memref<784x512xbf16, #tpu.memory_space<vmem>>, vector<784x512xbf16>
    %cst = arith.constant dense<0.000000e+00> : vector<8x512xf32>
    %2 = tpu.matmul %0, %1, %cst {dimension_numbers = #tpu.dot_dimension_numbers<[1], [0], [0], [1], [0, 0, 1, 1], [], []>} : vector<8x784xbf16>, vector<784x512xbf16>, vector<8x512xf32> -> vector<8x512xf32>
    %c0_3 = arith.constant 0 : index
    %c0_4 = arith.constant 0 : index
    %3 = vector.load %arg3[%c0_3, %c0_4] : memref<1x512xf32, #tpu.memory_space<vmem>>, vector<1x512xf32>
    %4 = vector.broadcast %3 : vector<1x512xf32> to vector<8x512xf32>
    %5 = arith.addf %2, %4 : vector<8x512xf32>
    %cst_5 = arith.constant 0.000000e+00 : f32
    %6 = vector.broadcast %cst_5 : f32 to vector<8x512xf32>
    %7 = arith.maximumf %5, %6 : vector<8x512xf32>
    %8 = arith.truncf %7 : vector<8x512xf32> to vector<8x512xbf16>
    %c0_6 = arith.constant 0 : index
    %c0_7 = arith.constant 0 : index
    %9 = vector.load %arg4[%c0_6, %c0_7] : memref<512x256xbf16, #tpu.memory_space<vmem>>, vector<512x256xbf16>
    %cst_8 = arith.constant dense<0.000000e+00> : vector<8x256xf32>
    %10 = tpu.matmul %8, %9, %cst_8 {dimension_numbers = #tpu.dot_dimension_numbers<[1], [0], [0], [1], [0, 0, 1, 1], [], []>} : vector<8x512xbf16>, vector<512x256xbf16>, vector<8x256xf32> -> vector<8x256xf32>
    %c0_9 = arith.constant 0 : index
    %c0_10 = arith.constant 0 : index
    %11 = vector.load %arg5[%c0_9, %c0_10] : memref<1x256xf32, #tpu.memory_space<vmem>>, vector<1x256xf32>
    %12 = vector.broadcast %11 : vector<1x256xf32> to vector<8x256xf32>
    %13 = arith.addf %10, %12 : vector<8x256xf32>
    %cst_11 = arith.constant 0.000000e+00 : f32
    %14 = vector.broadcast %cst_11 : f32 to vector<8x256xf32>
    %15 = arith.maximumf %13, %14 : vector<8x256xf32>
    %16 = arith.truncf %15 : vector<8x256xf32> to vector<8x256xbf16>
    %c0_12 = arith.constant 0 : index
    %c0_13 = arith.constant 0 : index
    %17 = vector.load %arg6[%c0_12, %c0_13] : memref<256x128xbf16, #tpu.memory_space<vmem>>, vector<256x128xbf16>
    %cst_14 = arith.constant dense<0.000000e+00> : vector<8x128xf32>
    %18 = tpu.matmul %16, %17, %cst_14 {dimension_numbers = #tpu.dot_dimension_numbers<[1], [0], [0], [1], [0, 0, 1, 1], [], []>} : vector<8x256xbf16>, vector<256x128xbf16>, vector<8x128xf32> -> vector<8x128xf32>
    %c0_15 = arith.constant 0 : index
    %c0_16 = arith.constant 0 : index
    %19 = vector.load %arg7[%c0_15, %c0_16] : memref<1x128xf32, #tpu.memory_space<vmem>>, vector<1x128xf32>
    %20 = vector.broadcast %19 : vector<1x128xf32> to vector<8x128xf32>
    %21 = arith.addf %18, %20 : vector<8x128xf32>
    %22 = tpu.iota {dimensions = array<i32: 1>} : vector<8x128xi32>
    %c10_i32 = arith.constant 10 : i32
    %23 = vector.broadcast %c10_i32 : i32 to vector<8x128xi32>
    %24 = arith.cmpi slt, %22, %23 : vector<8x128xi32>
    %cst_17 = arith.constant -1.000000e+30 : f32
    %25 = vector.broadcast %cst_17 : f32 to vector<8x128xf32>
    %26 = arith.select %24, %21, %25 : vector<8x128xi1>, vector<8x128xf32>
    %cst_18 = arith.constant dense<0xFF800000> : vector<8xf32>
    %27 = vector.multi_reduction <maximumf>, %26, %cst_18 [1] : vector<8x128xf32> to vector<8xf32>
    %28 = vector.shape_cast %27 : vector<8xf32> to vector<8x1xf32>
    %29 = vector.broadcast %28 : vector<8x1xf32> to vector<8x128xf32>
    %30 = arith.subf %26, %29 : vector<8x128xf32>
    %31 = math.exp %30 : vector<8x128xf32>
    %cst_19 = arith.constant dense<0.000000e+00> : vector<8xf32>
    %32 = vector.multi_reduction <add>, %31, %cst_19 [1] : vector<8x128xf32> to vector<8xf32>
    %33 = vector.shape_cast %32 : vector<8xf32> to vector<8x1xf32>
    %34 = math.log %33 : vector<8x1xf32>
    %35 = vector.broadcast %34 : vector<8x1xf32> to vector<8x128xf32>
    %36 = arith.subf %30, %35 : vector<8x128xf32>
    %c0_20 = arith.constant 0 : index
    %c0_21 = arith.constant 0 : index
    %37 = vector.load %arg8[%c0_20, %c0_21] : memref<8x128xf32, #tpu.memory_space<vmem>>, vector<8x128xf32>
    tpu.vector_store %arg8[%c0_20, %c0_21], %36 {strides = array<i32>} : memref<8x128xf32, #tpu.memory_space<vmem>>, vector<8x128xf32>,
    return
  }
  func.func @transform_0(%arg0: i32) -> (i32, i32) {
    %c0_i32 = arith.constant 0 : i32
    %c0_i32_0 = arith.constant 0 : i32
    return %arg0, %c0_i32 : i32, i32
  }
  func.func @transform_1(%arg0: i32) -> (i32, i32) {
    %c0_i32 = arith.constant 0 : i32
    %c0_i32_0 = arith.constant 0 : i32
    %c0_i32_1 = arith.constant 0 : i32
    return %c0_i32, %c0_i32_0 : i32, i32
  }
  func.func @transform_2(%arg0: i32) -> (i32, i32) {
    %c0_i32 = arith.constant 0 : i32
    %c0_i32_0 = arith.constant 0 : i32
    %c0_i32_1 = arith.constant 0 : i32
    return %c0_i32, %c0_i32_0 : i32, i32
  }
  func.func @transform_3(%arg0: i32) -> (i32, i32) {
    %c0_i32 = arith.constant 0 : i32
    %c0_i32_0 = arith.constant 0 : i32
    %c0_i32_1 = arith.constant 0 : i32
    return %c0_i32, %c0_i32_0 : i32, i32
  }
  func.func @transform_4(%arg0: i32) -> (i32, i32) {
    %c0_i32 = arith.constant 0 : i32
    %c0_i32_0 = arith.constant 0 : i32
    %c0_i32_1 = arith.constant 0 : i32
    return %c0_i32, %c0_i32_0 : i32, i32
  }
  func.func @transform_5(%arg0: i32) -> (i32, i32) {
    %c0_i32 = arith.constant 0 : i32
    %c0_i32_0 = arith.constant 0 : i32
    %c0_i32_1 = arith.constant 0 : i32
    return %c0_i32, %c0_i32_0 : i32, i32
  }
  func.func @transform_6(%arg0: i32) -> (i32, i32) {
    %c0_i32 = arith.constant 0 : i32
    %c0_i32_0 = arith.constant 0 : i32
    %c0_i32_1 = arith.constant 0 : i32
    return %c0_i32, %c0_i32_0 : i32, i32
  }
  func.func @transform_7(%arg0: i32) -> (i32, i32) {
    %c0_i32 = arith.constant 0 : i32
    %c0_i32_0 = arith.constant 0 : i32
    return %arg0, %c0_i32 : i32, i32
  }
}

</mosaic_0001>

<bundles_post_ra>
// kernel: tpu_custom_call.1
= control target key start
LH: loop header
LB: loop body
LE: loop exit
PB: predicated region body
PF: predicated region fallthrough
CT: control target
= control target key end

     0   :  { %12 = vsyncpa [#allocation3], 0  ;;  %s3400_s0 = inlined_call_operand.hbm [shape: bf16[8,784], index: 0, kind: input, shape index: {}]   ;;  %s3401_s1 = inlined_call_operand.hbm [shape: bf16[784,512], index: 1, kind: input, shape index: {}]   ;;  %s3402_s2 = inlined_call_operand.vmem [shape: f32[1,512], index: 2, kind: input, shape index: {}]   ;;  %s3403_s3 = inlined_call_operand.hbm [shape: bf16[512,256], index: 3, kind: input, shape index: {}]   ;;  %s3404_s4 = inlined_call_operand.vmem [shape: f32[1,256], index: 4, kind: input, shape index: {}]   ;;  %s3405_s5 = inlined_call_operand.hbm [shape: bf16[256,128], index: 5, kind: input, shape index: {}]   ;;  %s3406_s6 = inlined_call_operand.vmem [shape: f32[1,128], index: 6, kind: input, shape index: {}]   ;;  %s3407_s7 = inlined_call_operand.hbm [shape: f32[8,128], index: 7, kind: output, shape index: {}]  }
   0x1   :  { %13 = vsyncpa [#allocation6], 0 }
   0x2   :  { %14 = vsyncpa [#allocation9], 0 }
   0x3   :  { %15 = vsyncpa [#allocation4], 0  ;;  %s3221_s24 = smov [#allocation5]   ;;  %s3103_s28 = scalar_lea.hbm %s3401_s1, 25088 }
   0x4   :  { %s31_s25 = sshll.u32 %s3221_s24, 4  ;;  %p3104_p0 = scmp.ne.s32.totalorder %s3401_s1, %s3103_s28  ;;  %s32_s25 = int_to_ptr.vmem [resolvable:$true] %s31_s25 }
   0x5   :  { %p3107_p1 = scmp.lt.u32.totalorder %s3103_s28, %s3401_s1 }
   0x7   :  { %p3109_p2 = pnand %p3107_p1, %p3104_p0 }
   0x9   :  { %3112 = shalt.err (!%p3109_p2)
}
   0xa   :  { %s3113_s10 = scalar_lea.vmem %s32_s25, 25088  ;;  %p3118_p4 = scmp.lt.s32.totalorder %s32_s25, %s32_s25 }
   0xb   :  { %p3114_p3 = scmp.ne.s32.totalorder %s32_s25, %s3113_s10  ;;  %p3119_p5 = scmp.lt.s32.totalorder %s3113_s10, %s3113_s10 }
   0xd   :  { %p3120_p6 = por %p3119_p5, %p3118_p4 }
   0xf   :  { %p3121_p7 = pnand %p3120_p6, %p3114_p3 }
  0x11   :  { %3124 = shalt.err (!%p3121_p7)
}
  0x12   :  { %s3222_s11 = smov 256   ;;  %s3223_s12 = smov 16  }
  0x13   :  { %37 = dma.hbm_to_vmem [thread:$0]  %s3401_s1, 25088, %s32_s25, [#allocation6], %s3222_s11, %s3222_s11, %s3223_s12  }
  0x14   :  { %s3224_s15 = smov [#allocation2]   ;;  %s3225_s17 = smov [#allocation7]  }
  0x15   :  { %s22_s16 = sshll.u32 %s3224_s15, 4  ;;  %s45_s18 = sshll.u32 %s3225_s17, 4  ;;  %s23_s16 = int_to_ptr.vmem [resolvable:$true] %s22_s16  ;;  %s46_s18 = int_to_ptr.vmem [resolvable:$true] %s45_s18 }
  0x16   :  { %s3125_s21 = scalar_lea.hbm %s3400_s0, 448 }
  0x17   :  { %p3126_p8 = scmp.ne.s32.totalorder %s3400_s0, %s3125_s21  ;;  %p3129_p9 = scmp.lt.u32.totalorder %s3125_s21, %s3400_s0 }
  0x19   :  { %p3131_p10 = pnand %p3129_p9, %p3126_p8 }
  0x1b   :  { %3134 = shalt.err (!%p3131_p10)
}
  0x1c   :  { %s3135_s1 = scalar_lea.vmem %s23_s16, 448  ;;  %p3140_p12 = scmp.lt.s32.totalorder %s23_s16, %s23_s16 }
  0x1d   :  { %p3136_p11 = scmp.ne.s32.totalorder %s23_s16, %s3135_s1  ;;  %p3141_p13 = scmp.lt.s32.totalorder %s3135_s1, %s3135_s1 }
  0x1f   :  { %p3142_p0 = por %p3141_p13, %p3140_p12 }
  0x21   :  { %p3143_p1 = pnand %p3142_p0, %p3136_p11 }
  0x23   :  { %3146 = shalt.err (!%p3143_p1)
}
  0x24   :  { %25 = dma.hbm_to_vmem [thread:$0]  %s3400_s0, 448, %s23_s16, [#allocation3]  }
  0x25   :  { %s3147_s30 = scalar_lea.hbm %s3403_s3, 8192 }
  0x26   :  { %p3148_p2 = scmp.ne.s32.totalorder %s3403_s3, %s3147_s30  ;;  %p3151_p3 = scmp.lt.u32.totalorder %s3147_s30, %s3403_s3 }
  0x28   :  { %p3153_p4 = pnand %p3151_p3, %p3148_p2 }
  0x2a   :  { %3156 = shalt.err (!%p3153_p4)
}
  0x2b   :  { %s3157_s12 = scalar_lea.vmem %s46_s18, 8192  ;;  %p3162_p6 = scmp.lt.s32.totalorder %s46_s18, %s46_s18 }
  0x2c   :  { %p3158_p5 = scmp.ne.s32.totalorder %s46_s18, %s3157_s12  ;;  %p3163_p7 = scmp.lt.s32.totalorder %s3157_s12, %s3157_s12 }
  0x2e   :  { %p3164_p8 = por %p3163_p7, %p3162_p6 }
  0x30   :  { %p3165_p9 = pnand %p3164_p8, %p3158_p5 }
  0x32   :  { %3168 = shalt.err (!%p3165_p9)
}
  0x33   :  { %s3226_s0 = smov 128   ;;  %s3227_s13 = smov 8  }
  0x34   :  { %51 = dma.hbm_to_vmem [thread:$0]  %s3403_s3, 8192, %s46_s18, [#allocation6], %s3226_s0, %s3226_s0, %s3227_s13  }
  0x35   :  { %s3228_s16 = smov [#allocation8]   ;;  %s3169_s21 = scalar_lea.hbm %s3405_s5, 2048 }
  0x36   :  { %s59_s17 = sshll.u32 %s3228_s16, 4  ;;  %p3170_p10 = scmp.ne.s32.totalorder %s3405_s5, %s3169_s21  ;;  %s60_s17 = int_to_ptr.vmem [resolvable:$true] %s59_s17 }
  0x37   :  { %p3173_p11 = scmp.lt.u32.totalorder %s3169_s21, %s3405_s5 }
  0x39   :  { %p3175_p12 = pnand %p3173_p11, %p3170_p10 }
  0x3b   :  { %3178 = shalt.err (!%p3175_p12)
}
  0x3c   :  { %s3179_s1 = scalar_lea.vmem %s60_s17, 2048  ;;  %p3184_p0 = scmp.lt.s32.totalorder %s60_s17, %s60_s17 }
  0x3d   :  { %p3180_p13 = scmp.ne.s32.totalorder %s60_s17, %s3179_s1  ;;  %p3185_p1 = scmp.lt.s32.totalorder %s3179_s1, %s3179_s1 }
  0x3f   :  { %p3186_p2 = por %p3185_p1, %p3184_p0 }
  0x41   :  { %p3187_p3 = pnand %p3186_p2, %p3180_p13 }
  0x43   :  { %3190 = shalt.err (!%p3187_p3)
}
  0x44   :  { %s3229_s3 = smov 64   ;;  %s3230_s18 = smov 4  }
  0x45   :  { %65 = dma.hbm_to_vmem [thread:$0]  %s3405_s5, 2048, %s60_s17, [#allocation9], %s3229_s3, %s3229_s3, %s3230_s18  }
  0x46   :  { %3213 = dma.done.wait [#allocation3], 448  }
  0x47   :  { %3214 = vsyncadd [#allocation3], 4294966848 }
  0x48   :  { %3215 = dma.done.wait [#allocation6], 33280  }
  0x49   :  { %3216 = vsyncadd [#allocation6], 4294934016 }
  0x4a   :  { %3217 = dma.done.wait [#allocation9], 2048  }
  0x4b   :  { %3218 = vsyncadd [#allocation9], 4294965248  ;;  %v2686_v0 = vld [vmem:[#allocation5 + $0x4] ss:$16 sps:$4 sm:$0xff]   ;;  %v2690_v2 = vld [vmem:[#allocation5] ss:$16 sps:$4 sm:$0xff]  }
  0x4c   :  { %v2688_v1 = vld [vmem:[#allocation5 + $0x204] ss:$16 sps:$4 sm:$0xff]   ;;  %1311 = vmatprep.subr.bf16.mxu1 %v2686_v0  ;;  %v2691_v3 = vld [vmem:[#allocation5 + $0x200] ss:$16 sps:$4 sm:$0xff]   ;;  %vm1307_vm0 = vcmask 130048   ;;  %s3232_s8 = smov [#allocation10]  }
  0x4d   :  { %1352 = vmatprep.subr.bf16.mxu0 %v2688_v1  ;;  %v2692_v4 = vld [vmem:[#allocation5 + $0x24] ss:$16 sps:$4 sm:$0xff]   ;;  %1312 = vmatpush1.bf16.msra.mxu1 %v2690_v2  ;;  %v2696_v6 = vld [vmem:[#allocation5 + $0x20] ss:$16 sps:$4 sm:$0xff]   ;;  %s2325_s9 = sshll.u32 %s3232_s8, 4  ;;  %s2326_s9 = int_to_ptr.vmem [resolvable:$true] %s2325_s9 }
  0x4e   :  { %1353 = vmatpush1.bf16.msra.mxu0 %v2691_v3  ;;  %v2694_v5 = vld [vmem:[#allocation5 + $0x224] ss:$16 sps:$4 sm:$0xff]   ;;  %1313 = vmatprep.subr.bf16.mxu1 %v2692_v4  ;;  %v2697_v7 = vld [vmem:[#allocation5 + $0x220] ss:$16 sps:$4 sm:$0xff]   ;;  %p3196_p5 = scmp.lt.s32.totalorder %s2326_s9, %s2326_s9 }
  0x4f   :  { %1354 = vmatprep.subr.bf16.mxu0 %v2694_v5  ;;  %v2698_v8 = vld [vmem:[#allocation5 + $0x44] ss:$16 sps:$4 sm:$0xff]   ;;  %v2702_v10 = vld [vmem:[#allocation5 + $0x40] ss:$16 sps:$4 sm:$0xff]   ;;  %v2791_v5 = vld [vmem:[#allocation5 + $0xc] ss:$16 sps:$4 sm:$0xff]  }
  0x50   :  { %v2700_v9 = vld [vmem:[#allocation5 + $0x244] ss:$16 sps:$4 sm:$0xff]   ;;  %v2703_v11 = vld [vmem:[#allocation5 + $0x240] ss:$16 sps:$4 sm:$0xff]  }
  0x51   :  { %1314 = vmatpush1.bf16.msra.mxu1 %v2696_v6  ;;  %v2704_v12 = vld [vmem:[#allocation5 + $0x64] ss:$16 sps:$4 sm:$0xff]   ;;  %v2708_v14 = vld [vmem:[#allocation5 + $0x60] ss:$16 sps:$4 sm:$0xff]  }
  0x52   :  { %1355 = vmatpush1.bf16.msra.mxu0 %v2697_v7  ;;  %1315 = vmatprep.subr.bf16.mxu1 %v2698_v8  ;;  %v2706_v13 = vld [vmem:[#allocation5 + $0x264] ss:$16 sps:$4 sm:$0xff]   ;;  %v2709_v15 = vld [vmem:[#allocation5 + $0x260] ss:$16 sps:$4 sm:$0xff]  }
  0x53   :  { %1356 = vmatprep.subr.bf16.mxu0 %v2700_v9  ;;  %v2710_v16 = vld [vmem:[#allocation5 + $0x84] ss:$16 sps:$4 sm:$0xff]   ;;  %v2714_v18 = vld [vmem:[#allocation5 + $0x80] ss:$16 sps:$4 sm:$0xff]   ;;  %v2789_v9 = vld [vmem:[#allocation5 + $0x8] ss:$16 sps:$4 sm:$0xff]  }
  0x54   :  { %v2712_v17 = vld [vmem:[#allocation5 + $0x284] ss:$16 sps:$4 sm:$0xff]   ;;  %v2715_v19 = vld [vmem:[#allocation5 + $0x280] ss:$16 sps:$4 sm:$0xff]  }
  0x55   :  { %1316 = vmatpush1.bf16.msra.mxu1 %v2702_v10  ;;  %v2716_v20 = vld [vmem:[#allocation5 + $0xa4] ss:$16 sps:$4 sm:$0xff]   ;;  %v2720_v22 = vld [vmem:[#allocation5 + $0xa0] ss:$16 sps:$4 sm:$0xff]  }
  0x56   :  { %1357 = vmatpush1.bf16.msra.mxu0 %v2703_v11  ;;  %1317 = vmatprep.subr.bf16.mxu1 %v2704_v12  ;;  %v2718_v21 = vld [vmem:[#allocation5 + $0x2a4] ss:$16 sps:$4 sm:$0xff]   ;;  %v2721_v23 = vld [vmem:[#allocation5 + $0x2a0] ss:$16 sps:$4 sm:$0xff]   ;;  %v2797_v11 = vld [vmem:[#allocation5 + $0x2c] ss:$16 sps:$4 sm:$0xff]  }
  0x57   :  { %1358 = vmatprep.subr.bf16.mxu0 %v2706_v13  ;;  %v2722_v24 = vld [vmem:[#allocation5 + $0xc4] ss:$16 sps:$4 sm:$0xff]   ;;  %v2726_v26 = vld [vmem:[#allocation5 + $0xc0] ss:$16 sps:$4 sm:$0xff]   ;;  %v2795_v13 = vld [vmem:[#allocation5 + $0x28] ss:$16 sps:$4 sm:$0xff]  }
  0x58   :  { %v2724_v25 = vld [vmem:[#allocation5 + $0x2c4] ss:$16 sps:$4 sm:$0xff]   ;;  %v2727_v27 = vld [vmem:[#allocation5 + $0x2c0] ss:$16 sps:$4 sm:$0xff]  }
  0x59   :  { %1318 = vmatpush1.bf16.msra.mxu1 %v2708_v14  ;;  %v2728_v28 = vld [vmem:[#allocation5 + $0xe4] ss:$16 sps:$4 sm:$0xff]   ;;  %v2732_v30 = vld [vmem:[#allocation5 + $0xe0] ss:$16 sps:$4 sm:$0xff]  }
  0x5a   :  { %1359 = vmatpush1.bf16.msra.mxu0 %v2709_v15  ;;  %1319 = vmatprep.subr.bf16.mxu1 %v2710_v16  ;;  %v2730_v29 = vld [vmem:[#allocation5 + $0x2e4] ss:$16 sps:$4 sm:$0xff]   ;;  %v2733_v31 = vld [vmem:[#allocation5 + $0x2e0] ss:$16 sps:$4 sm:$0xff]   ;;  %v2803_v15 = vld [vmem:[#allocation5 + $0x4c] ss:$16 sps:$4 sm:$0xff]  }
  0x5b   :  { %1360 = vmatprep.subr.bf16.mxu0 %v2712_v17  ;;  %v2734_v32 = vld [vmem:[#allocation5 + $0x104] ss:$16 sps:$4 sm:$0xff]   ;;  %v2738_v34 = vld [vmem:[#allocation5 + $0x100] ss:$16 sps:$4 sm:$0xff]   ;;  %v2801_v17 = vld [vmem:[#allocation5 + $0x48] ss:$16 sps:$4 sm:$0xff]  }
  0x5c   :  { %v2736_v33 = vld [vmem:[#allocation5 + $0x304] ss:$16 sps:$4 sm:$0xff]   ;;  %v2739_v35 = vld [vmem:[#allocation5 + $0x300] ss:$16 sps:$4 sm:$0xff]  }
  0x5d   :  { %1320 = vmatpush1.bf16.msra.mxu1 %v2714_v18  ;;  %v2740_v36 = vld [vmem:[#allocation5 + $0x124] ss:$16 sps:$4 sm:$0xff]   ;;  %v2744_v38 = vld [vmem:[#allocation5 + $0x120] ss:$16 sps:$4 sm:$0xff]  }
  0x5e   :  { %1361 = vmatpush1.bf16.msra.mxu0 %v2715_v19  ;;  %1321 = vmatprep.subr.bf16.mxu1 %v2716_v20  ;;  %v2742_v37 = vld [vmem:[#allocation5 + $0x324] ss:$16 sps:$4 sm:$0xff]   ;;  %v2745_v39 = vld [vmem:[#allocation5 + $0x320] ss:$16 sps:$4 sm:$0xff]   ;;  %v2809_v19 = vld [vmem:[#allocation5 + $0x6c] ss:$16 sps:$4 sm:$0xff]  }
  0x5f   :  { %1362 = vmatprep.subr.bf16.mxu0 %v2718_v21  ;;  %v2746_v40 = vld [vmem:[#allocation5 + $0x144] ss:$16 sps:$4 sm:$0xff]   ;;  %v2750_v42 = vld [vmem:[#allocation5 + $0x140] ss:$16 sps:$4 sm:$0xff]   ;;  %v2807_v21 = vld [vmem:[#allocation5 + $0x68] ss:$16 sps:$4 sm:$0xff]  }
  0x60   :  { %v2748_v41 = vld [vmem:[#allocation5 + $0x344] ss:$16 sps:$4 sm:$0xff]   ;;  %v2751_v43 = vld [vmem:[#allocation5 + $0x340] ss:$16 sps:$4 sm:$0xff]  }
  0x61   :  { %1322 = vmatpush1.bf16.msra.mxu1 %v2720_v22  ;;  %v2752_v44 = vld [vmem:[#allocation5 + $0x164] ss:$16 sps:$4 sm:$0xff]   ;;  %v82_v48 = vld [vmem:[#allocation2 + $0x8] sm:$0xff] }
  0x62   :  { %1363 = vmatpush1.bf16.msra.mxu0 %v2721_v23  ;;  %1323 = vmatprep.subr.bf16.mxu1 %v2722_v24  ;;  %v2754_v45 = vld [vmem:[#allocation5 + $0x364] ss:$16 sps:$4 sm:$0xff]   ;;  %v2756_v49 = vld [vmem:[#allocation5 + $0x160] ss:$16 sps:$4 sm:$0xff]   ;;  %v3323_v51 = vcombine.high %v82_v48, %v82_v48  ;;  %v3329_v7 = vcombine.low %v82_v48, %v82_v48  ;;  %v2815_v23 = vld [vmem:[#allocation5 + $0x8c] ss:$16 sps:$4 sm:$0xff]  }
  0x63   :  { %1364 = vmatprep.subr.bf16.mxu0 %v2724_v25  ;;  %v81_v46 = vld [vmem:[#allocation2] sm:$0xff]  ;;  %v2757_v50 = vld [vmem:[#allocation5 + $0x360] ss:$16 sps:$4 sm:$0xff]  }
  0x64   :  { %v3321_v47 = vcombine.high %v81_v46, %v81_v46  ;;  %v2758_v52 = vld [vmem:[#allocation5 + $0x184] ss:$16 sps:$4 sm:$0xff]   ;;  %1384 = vmatprep.mubr.bf16.mxu0 %v3323_v51  ;;  %v2762_v54 = vld [vmem:[#allocation5 + $0x180] ss:$16 sps:$4 sm:$0xff]   ;;  %v3327_v6 = vcombine.low %v81_v46, %v81_v46  ;;  %v2813_v25 = vld [vmem:[#allocation5 + $0x88] ss:$16 sps:$4 sm:$0xff]  }
  0x65   :  { %1324 = vmatpush1.bf16.msra.mxu1 %v2726_v26  ;;  %v2760_v53 = vld [vmem:[#allocation5 + $0x384] ss:$16 sps:$4 sm:$0xff]   ;;  %v2763_v55 = vld [vmem:[#allocation5 + $0x380] ss:$16 sps:$4 sm:$0xff]  }
  0x66   :  { %1365 = vmatpush1.bf16.msra.mxu0 %v2727_v27  ;;  %1325 = vmatprep.subr.bf16.mxu1 %v2728_v28  ;;  %v2764_v56 = vld [vmem:[#allocation5 + $0x1a4] ss:$16 sps:$4 sm:$0xff]   ;;  %v2768_v58 = vld [vmem:[#allocation5 + $0x1a0] ss:$16 sps:$4 sm:$0xff]   ;;  %v2821_v27 = vld [vmem:[#allocation5 + $0xac] ss:$16 sps:$4 sm:$0xff]  }
  0x67   :  { %1366 = vmatprep.subr.bf16.mxu0 %v2730_v29  ;;  %1343 = vmatprep.mubr.bf16.mxu1 %v3321_v47  ;;  %v2766_v57 = vld [vmem:[#allocation5 + $0x3a4] ss:$16 sps:$4 sm:$0xff]   ;;  %v2769_v59 = vld [vmem:[#allocation5 + $0x3a0] ss:$16 sps:$4 sm:$0xff]   ;;  %v2819_v29 = vld [vmem:[#allocation5 + $0xa8] ss:$16 sps:$4 sm:$0xff]  }
  0x68   :  { %v2770_v60 = vld [vmem:[#allocation5 + $0x1c4] ss:$16 sps:$4 sm:$0xff]   ;;  %v2774_v62 = vld [vmem:[#allocation5 + $0x1c0] ss:$16 sps:$4 sm:$0xff]  }
  0x69   :  { %1326 = vmatpush1.bf16.msra.mxu1 %v2732_v30  ;;  %v2772_v61 = vld [vmem:[#allocation5 + $0x3c4] ss:$16 sps:$4 sm:$0xff]   ;;  %v2775_v63 = vld [vmem:[#allocation5 + $0x3c0] ss:$16 sps:$4 sm:$0xff]  }
  0x6a   :  { %1367 = vmatpush1.bf16.msra.mxu0 %v2733_v31  ;;  %1327 = vmatprep.subr.bf16.mxu1 %v2734_v32  ;;  %v2776_v0 = vld [vmem:[#allocation5 + $0x1e4] ss:$16 sps:$4 sm:$0xff]   ;;  %v2780_v2 = vld [vmem:[#allocation5 + $0x1e0] ss:$16 sps:$4 sm:$0xff]   ;;  %v2827_v31 = vld [vmem:[#allocation5 + $0xcc] ss:$16 sps:$4 sm:$0xff]  }
  0x6b   :  { %1368 = vmatprep.subr.bf16.mxu0 %v2736_v33  ;;  %v2778_v1 = vld [vmem:[#allocation5 + $0x3e4] ss:$16 sps:$4 sm:$0xff]   ;;  %v2781_v3 = vld [vmem:[#allocation5 + $0x3e0] ss:$16 sps:$4 sm:$0xff]  }
  0x6c   :  { %v2788_v4 = vld [vmem:[#allocation5 + $0x404] ss:$16 sps:$4 sm:$0xff]   ;;  %v2786_v8 = vld [vmem:[#allocation5 + $0x400] ss:$16 sps:$4 sm:$0xff]  }
  0x6d   :  { %1328 = vmatpush1.bf16.msra.mxu1 %v2738_v34  ;;  %v2794_v10 = vld [vmem:[#allocation5 + $0x424] ss:$16 sps:$4 sm:$0xff]   ;;  %v2792_v12 = vld [vmem:[#allocation5 + $0x420] ss:$16 sps:$4 sm:$0xff]  }
  0x6e   :  { %1369 = vmatpush1.bf16.msra.mxu0 %v2739_v35  ;;  %1329 = vmatprep.subr.bf16.mxu1 %v2740_v36  ;;  %v2800_v14 = vld [vmem:[#allocation5 + $0x444] ss:$16 sps:$4 sm:$0xff]   ;;  %v2798_v16 = vld [vmem:[#allocation5 + $0x440] ss:$16 sps:$4 sm:$0xff]   ;;  %v2825_v35 = vld [vmem:[#allocation5 + $0xc8] ss:$16 sps:$4 sm:$0xff]  }
  0x6f   :  { %1370 = vmatprep.subr.bf16.mxu0 %v2742_v37  ;;  %v2806_v18 = vld [vmem:[#allocation5 + $0x464] ss:$16 sps:$4 sm:$0xff]   ;;  %v2804_v20 = vld [vmem:[#allocation5 + $0x460] ss:$16 sps:$4 sm:$0xff]   ;;  %v2833_v37 = vld [vmem:[#allocation5 + $0xec] ss:$16 sps:$4 sm:$0xff]  }
  0x70   :  { %v2812_v22 = vld [vmem:[#allocation5 + $0x484] ss:$16 sps:$4 sm:$0xff]   ;;  %v2810_v24 = vld [vmem:[#allocation5 + $0x480] ss:$16 sps:$4 sm:$0xff]  }
  0x71   :  { %1330 = vmatpush1.bf16.msra.mxu1 %v2744_v38  ;;  %v2818_v26 = vld [vmem:[#allocation5 + $0x4a4] ss:$16 sps:$4 sm:$0xff]   ;;  %v2816_v28 = vld [vmem:[#allocation5 + $0x4a0] ss:$16 sps:$4 sm:$0xff]  }
  0x72   :  { %1371 = vmatpush1.bf16.msra.mxu0 %v2745_v39  ;;  %1331 = vmatprep.subr.bf16.mxu1 %v2746_v40  ;;  %v2824_v30 = vld [vmem:[#allocation5 + $0x4c4] ss:$16 sps:$4 sm:$0xff]   ;;  %v2822_v33 = vld [vmem:[#allocation5 + $0x4c0] ss:$16 sps:$4 sm:$0xff]   ;;  %v2831_v39 = vld [vmem:[#allocation5 + $0xe8] ss:$16 sps:$4 sm:$0xff]  }
  0x73   :  { %1372 = vmatprep.subr.bf16.mxu0 %v2748_v41  ;;  %v3334_v32 = vld [vmem:[#allocation2 + $0x10] sm:$0xff]  ;;  %v2828_v38 = vld [vmem:[#allocation5 + $0x4e0] ss:$16 sps:$4 sm:$0xff]   ;;  %v2839_v41 = vld [vmem:[#allocation5 + $0x10c] ss:$16 sps:$4 sm:$0xff]  }
  0x74   :  { %v3338_v34 = vcombine.high %v3334_v32, %v3334_v32  ;;  %v2830_v36 = vld [vmem:[#allocation5 + $0x4e4] ss:$16 sps:$4 sm:$0xff]   ;;  %v2840_v46 = vld [vmem:[#allocation5 + $0x520] ss:$16 sps:$4 sm:$0xff]  }
  0x75   :  { %1332 = vmatpush1.bf16.msra.mxu1 %v2750_v42  ;;  %v2836_v40 = vld [vmem:[#allocation5 + $0x504] ss:$16 sps:$4 sm:$0xff]   ;;  %v2834_v42 = vld [vmem:[#allocation5 + $0x500] ss:$16 sps:$4 sm:$0xff]  }
  0x76   :  { %1373 = vmatpush1.bf16.msra.mxu0 %v2751_v43  ;;  %1333 = vmatprep.subr.bf16.mxu1 %v2752_v44  ;;  %v2837_v43 = vld [vmem:[#allocation5 + $0x108] ss:$16 sps:$4 sm:$0xff]   ;;  %v2842_v44 = vld [vmem:[#allocation5 + $0x524] ss:$16 sps:$4 sm:$0xff]  }
  0x77   :  { %1374 = vmatprep.subr.bf16.mxu0 %v2754_v45  ;;  %v2845_v45 = vld [vmem:[#allocation5 + $0x12c] ss:$16 sps:$4 sm:$0xff]   ;;  %v2848_v48 = vld [vmem:[#allocation5 + $0x544] ss:$16 sps:$4 sm:$0xff]  }
  0x79   :  { %1334 = vmatpush1.bf16.msra.mxu1 %v2756_v49  ;;  %v2851_v49 = vld [vmem:[#allocation5 + $0x14c] ss:$16 sps:$4 sm:$0xff]  }
  0x7a   :  { %1375 = vmatpush1.bf16.msra.mxu0 %v2757_v50  ;;  %1335 = vmatprep.subr.bf16.mxu1 %v2758_v52  ;;  %v2846_v50 = vld [vmem:[#allocation5 + $0x540] ss:$16 sps:$4 sm:$0xff]   ;;  %v2849_v52 = vld [vmem:[#allocation5 + $0x148] ss:$16 sps:$4 sm:$0xff]  }
  0x7b   :  { %1376 = vmatprep.subr.bf16.mxu0 %v2760_v53  ;;  %v2854_v53 = vld [vmem:[#allocation5 + $0x564] ss:$16 sps:$4 sm:$0xff]  }
  0x7d   :  { %1336 = vmatpush1.bf16.msra.mxu1 %v2762_v54  ;;  %v2857_v54 = vld [vmem:[#allocation5 + $0x16c] ss:$16 sps:$4 sm:$0xff]  }
  0x7e   :  { %1377 = vmatpush1.bf16.msra.mxu0 %v2763_v55  ;;  %1337 = vmatprep.subr.bf16.mxu1 %v2764_v56  ;;  %v2852_v55 = vld [vmem:[#allocation5 + $0x560] ss:$16 sps:$4 sm:$0xff]   ;;  %v2855_v56 = vld [vmem:[#allocation5 + $0x168] ss:$16 sps:$4 sm:$0xff]  }
  0x7f   :  { %1378 = vmatprep.subr.bf16.mxu0 %v2766_v57  ;;  %v2860_v57 = vld [vmem:[#allocation5 + $0x584] ss:$16 sps:$4 sm:$0xff]  }
  0x81   :  { %1338 = vmatpush1.bf16.msra.mxu1 %v2768_v58  ;;  %v2863_v58 = vld [vmem:[#allocation5 + $0x18c] ss:$16 sps:$4 sm:$0xff]  }
  0x82   :  { %1379 = vmatpush1.bf16.msra.mxu0 %v2769_v59  ;;  %1339 = vmatprep.subr.bf16.mxu1 %v2770_v60  ;;  %v2858_v59 = vld [vmem:[#allocation5 + $0x580] ss:$16 sps:$4 sm:$0xff]   ;;  %v2861_v60 = vld [vmem:[#allocation5 + $0x188] ss:$16 sps:$4 sm:$0xff]  }
  0x83   :  { %1380 = vmatprep.subr.bf16.mxu0 %v2772_v61  ;;  %v2866_v61 = vld [vmem:[#allocation5 + $0x5a4] ss:$16 sps:$4 sm:$0xff]  }
  0x85   :  { %1340 = vmatpush1.bf16.msra.mxu1 %v2774_v62  ;;  %v2869_v62 = vld [vmem:[#allocation5 + $0x1ac] ss:$16 sps:$4 sm:$0xff]  }
  0x86   :  { %1381 = vmatpush1.bf16.msra.mxu0 %v2775_v63  ;;  %1341 = vmatprep.subr.bf16.mxu1 %v2776_v0  ;;  %v2864_v63 = vld [vmem:[#allocation5 + $0x5a0] ss:$16 sps:$4 sm:$0xff]   ;;  %v2867_v0 = vld [vmem:[#allocation5 + $0x1a8] ss:$16 sps:$4 sm:$0xff]  }
  0x87   :  { %1382 = vmatprep.subr.bf16.mxu0 %v2778_v1  ;;  %v2872_v1 = vld [vmem:[#allocation5 + $0x5c4] ss:$16 sps:$4 sm:$0xff]  }
  0x89   :  { %1342 = vmatpush1.bf16.msra.mxu1 %v2780_v2  ;;  %v2875_v2 = vld [vmem:[#allocation5 + $0x1cc] ss:$16 sps:$4 sm:$0xff]  }
  0x8a   :  { %1383 = vmatpush1.bf16.msra.mxu0 %v2781_v3  ;;  %1475 = vmatprep.subr.bf16.mxu1 %v2791_v5  ;;  %v2870_v3 = vld [vmem:[#allocation5 + $0x5c0] ss:$16 sps:$4 sm:$0xff]   ;;  %v2878_v5 = vld [vmem:[#allocation5 + $0x5e4] ss:$16 sps:$4 sm:$0xff]  }
  0x8b   :  { %1393 = vmatprep.subr.bf16.mxu0 %v2788_v4  ;;  %v2873_v4 = vld [vmem:[#allocation5 + $0x1c8] ss:$16 sps:$4 sm:$0xff]  }
  0x8c   :  { %1344 = vmatmul.mubr.bf16.vlgmr.msra.gmra.mrb[0].mxu1 %v3327_v6 }
  0x8d   :  { %1385 = vmatmul.mubr.bf16.vlgmr.msra.gmra.mrb[0].mxu0 %v3329_v7  ;;  %1476 = vmatpush1.bf16.msra.mxu1 %v2789_v9  ;;  %v2876_v9 = vld [vmem:[#allocation5 + $0x5e0] ss:$16 sps:$4 sm:$0xff]  }
  0x8e   :  { %1394 = vmatpush1.bf16.msra.mxu0 %v2786_v8  ;;  %1477 = vmatprep.subr.bf16.mxu1 %v2797_v11  ;;  %v2881_v8 = vld [vmem:[#allocation5 + $0x1ec] ss:$16 sps:$4 sm:$0xff]  }
  0x8f   :  { %1395 = vmatprep.subr.bf16.mxu0 %v2794_v10  ;;  %1507 = vmatprep.mubr.bf16.mxu1 %v3321_v47  ;;  %v2843_v47 = vld [vmem:[#allocation5 + $0x128] ss:$16 sps:$4 sm:$0xff]   ;;  %v2886_v11 = vld [vmem:[#allocation5 + $0x20c] ss:$16 sps:$4 sm:$0xff]  }
  0x90   :  { %1425 = vmatprep.mubr.bf16.mxu0 %v3338_v34  ;;  %v2879_v10 = vld [vmem:[#allocation5 + $0x1e8] ss:$16 sps:$4 sm:$0xff]  }
  0x91   :  { %1478 = vmatpush1.bf16.msra.mxu1 %v2795_v13  ;;  %v3343_v13 = vcombine.low %v3334_v32, %v3334_v32  ;;  %v2989_v32 = vld [vmem:[#allocation7 + $0x4] ss:$8 sps:$4 sm:$0xff]  }
  0x92   :  { %1396 = vmatpush1.bf16.msra.mxu0 %v2792_v12  ;;  %1479 = vmatprep.subr.bf16.mxu1 %v2803_v15  ;;  %v2892_v12 = vld [vmem:[#allocation5 + $0x604] ss:$16 sps:$4 sm:$0xff]   ;;  %v2890_v15 = vld [vmem:[#allocation5 + $0x600] ss:$16 sps:$4 sm:$0xff]  }
  0x93   :  { %1397 = vmatprep.subr.bf16.mxu0 %v2800_v14  ;;  %v2884_v14 = vld [vmem:[#allocation5 + $0x208] ss:$16 sps:$4 sm:$0xff]  }
  0x95   :  { %1480 = vmatpush1.bf16.msra.mxu1 %v2801_v17  ;;  %v2983_v17 = vld [vmem:[#allocation5 + $0x60c] ss:$16 sps:$4 sm:$0xff]  }
  0x96   :  { %1398 = vmatpush1.bf16.msra.mxu0 %v2798_v16  ;;  %1481 = vmatprep.subr.bf16.mxu1 %v2809_v19  ;;  %v2889_v16 = vld [vmem:[#allocation5 + $0x22c] ss:$16 sps:$4 sm:$0xff]  }
  0x97   :  { %1399 = vmatprep.subr.bf16.mxu0 %v2806_v18  ;;  %v2887_v18 = vld [vmem:[#allocation5 + $0x228] ss:$16 sps:$4 sm:$0xff]   ;;  %v2895_v19 = vld [vmem:[#allocation5 + $0x24c] ss:$16 sps:$4 sm:$0xff]  }
  0x99   :  { %1482 = vmatpush1.bf16.msra.mxu1 %v2807_v21  ;;  %v2893_v21 = vld [vmem:[#allocation5 + $0x248] ss:$16 sps:$4 sm:$0xff]  }
  0x9a   :  { %1400 = vmatpush1.bf16.msra.mxu0 %v2804_v20  ;;  %1483 = vmatprep.subr.bf16.mxu1 %v2815_v23  ;;  %v3231_v20 = vmov 0   ;;  %v2896_v23 = vld [vmem:[#allocation2 + $0x18] ss:$0 sps:$4 sm:$0xff]  }
  0x9b   :  { %1401 = vmatprep.subr.bf16.mxu0 %v2812_v22  ;;  %v2899_v22 = vld [vmem:[#allocation5 + $0x26c] ss:$16 sps:$4 sm:$0xff]  }
  0x9d   :  { %1484 = vmatpush1.bf16.msra.mxu1 %v2813_v25  ;;  %v2981_v25 = vld [vmem:[#allocation5 + $0x608] ss:$16 sps:$4 sm:$0xff]  }
  0x9e   :  { %1402 = vmatpush1.bf16.msra.mxu0 %v2810_v24  ;;  %1485 = vmatprep.subr.bf16.mxu1 %v2821_v27  ;;  %v2897_v24 = vld [vmem:[#allocation5 + $0x268] ss:$16 sps:$4 sm:$0xff]   ;;  %v2905_v27 = vld [vmem:[#allocation5 + $0x2ac] ss:$16 sps:$4 sm:$0xff]  }
  0x9f   :  { %1403 = vmatprep.subr.bf16.mxu0 %v2818_v26  ;;  %v2902_v26 = vld [vmem:[#allocation5 + $0x28c] ss:$16 sps:$4 sm:$0xff]  }
  0xa1   :  { %1486 = vmatpush1.bf16.msra.mxu1 %v2819_v29  ;;  %v2906_v29 = vld [vmem:[#allocation5 + $0x2c8] ss:$16 sps:$4 sm:$0xff]  }
  0xa2   :  { %1404 = vmatpush1.bf16.msra.mxu0 %v2816_v28  ;;  %1487 = vmatprep.subr.bf16.mxu1 %v2827_v31  ;;  %v2903_v28 = vld [vmem:[#allocation5 + $0x2a8] ss:$16 sps:$4 sm:$0xff]  }
  0xa3   :  { %1405 = vmatprep.subr.bf16.mxu0 %v2824_v30  ;;  %v2911_v30 = vld [vmem:[#allocation5 + $0x2ec] ss:$16 sps:$4 sm:$0xff]   ;;  %v2987_v31 = vld [vmem:[#allocation7] ss:$8 sps:$4 sm:$0xff]  }
  0xa5   :  { %1488 = vmatpush1.bf16.msra.mxu1 %v2825_v35  ;;  %v2909_v35 = vld [vmem:[#allocation5 + $0x2e8] ss:$16 sps:$4 sm:$0xff]  }
  0xa6   :  { %1406 = vmatpush1.bf16.msra.mxu0 %v2822_v33  ;;  %1489 = vmatprep.subr.bf16.mxu1 %v2833_v37  ;;  %v2992_v33 = vld [vmem:[#allocation7 + $0x14] ss:$8 sps:$4 sm:$0xff]  }
  0xa7   :  { %1407 = vmatprep.subr.bf16.mxu0 %v2830_v36  ;;  %v2990_v36 = vld [vmem:[#allocation7 + $0x10] ss:$8 sps:$4 sm:$0xff]   ;;  %v2914_v37 = vld [vmem:[#allocation5 + $0x30c] ss:$16 sps:$4 sm:$0xff]  }
  0xa9   :  { %1490 = vmatpush1.bf16.msra.mxu1 %v2831_v39  ;;  %v2912_v39 = vld [vmem:[#allocation5 + $0x308] ss:$16 sps:$4 sm:$0xff]  }
  0xaa   :  { %1408 = vmatpush1.bf16.msra.mxu0 %v2828_v38  ;;  %1491 = vmatprep.subr.bf16.mxu1 %v2839_v41  ;;  %v2995_v38 = vld [vmem:[#allocation7 + $0x24] ss:$8 sps:$4 sm:$0xff]  }
  0xab   :  { %1409 = vmatprep.subr.bf16.mxu0 %v2836_v40  ;;  %v2993_v40 = vld [vmem:[#allocation7 + $0x20] ss:$8 sps:$4 sm:$0xff]   ;;  %v2917_v41 = vld [vmem:[#allocation5 + $0x32c] ss:$16 sps:$4 sm:$0xff]  }
  0xad   :  { %1492 = vmatpush1.bf16.msra.mxu1 %v2837_v43  ;;  %v2915_v43 = vld [vmem:[#allocation5 + $0x328] ss:$16 sps:$4 sm:$0xff]  }
  0xae   :  { %1410 = vmatpush1.bf16.msra.mxu0 %v2834_v42  ;;  %1493 = vmatprep.subr.bf16.mxu1 %v2845_v45  ;;  %v2998_v42 = vld [vmem:[#allocation7 + $0x34] ss:$8 sps:$4 sm:$0xff]  }
  0xaf   :  { %1411 = vmatprep.subr.bf16.mxu0 %v2842_v44  ;;  %v2996_v44 = vld [vmem:[#allocation7 + $0x30] ss:$8 sps:$4 sm:$0xff]   ;;  %v2920_v45 = vld [vmem:[#allocation5 + $0x34c] ss:$16 sps:$4 sm:$0xff]  }
  0xb1   :  { %1494 = vmatpush1.bf16.msra.mxu1 %v2843_v47  ;;  %v2918_v47 = vld [vmem:[#allocation5 + $0x348] ss:$16 sps:$4 sm:$0xff]  }
  0xb2   :  { %1412 = vmatpush1.bf16.msra.mxu0 %v2840_v46  ;;  %1495 = vmatprep.subr.bf16.mxu1 %v2851_v49  ;;  %v3001_v46 = vld [vmem:[#allocation7 + $0x44] ss:$8 sps:$4 sm:$0xff]  }
  0xb3   :  { %1413 = vmatprep.subr.bf16.mxu0 %v2848_v48  ;;  %v2999_v48 = vld [vmem:[#allocation7 + $0x40] ss:$8 sps:$4 sm:$0xff]   ;;  %v2923_v49 = vld [vmem:[#allocation5 + $0x36c] ss:$16 sps:$4 sm:$0xff]  }
  0xb5   :  { %1496 = vmatpush1.bf16.msra.mxu1 %v2849_v52  ;;  %v2921_v52 = vld [vmem:[#allocation5 + $0x368] ss:$16 sps:$4 sm:$0xff]  }
  0xb6   :  { %1414 = vmatpush1.bf16.msra.mxu0 %v2846_v50  ;;  %1497 = vmatprep.subr.bf16.mxu1 %v2857_v54  ;;  %v3004_v50 = vld [vmem:[#allocation7 + $0x54] ss:$8 sps:$4 sm:$0xff]  }
  0xb7   :  { %1415 = vmatprep.subr.bf16.mxu0 %v2854_v53  ;;  %v3002_v53 = vld [vmem:[#allocation7 + $0x50] ss:$8 sps:$4 sm:$0xff]   ;;  %v2926_v54 = vld [vmem:[#allocation5 + $0x38c] ss:$16 sps:$4 sm:$0xff]  }
  0xb9   :  { %1498 = vmatpush1.bf16.msra.mxu1 %v2855_v56  ;;  %v2924_v56 = vld [vmem:[#allocation5 + $0x388] ss:$16 sps:$4 sm:$0xff]  }
  0xba   :  { %1416 = vmatpush1.bf16.msra.mxu0 %v2852_v55  ;;  %1499 = vmatprep.subr.bf16.mxu1 %v2863_v58  ;;  %v3007_v55 = vld [vmem:[#allocation7 + $0x64] ss:$8 sps:$4 sm:$0xff]  }
  0xbb   :  { %1417 = vmatprep.subr.bf16.mxu0 %v2860_v57  ;;  %v3005_v57 = vld [vmem:[#allocation7 + $0x60] ss:$8 sps:$4 sm:$0xff]   ;;  %v2929_v58 = vld [vmem:[#allocation5 + $0x3ac] ss:$16 sps:$4 sm:$0xff]  }
  0xbd   :  { %1500 = vmatpush1.bf16.msra.mxu1 %v2861_v60  ;;  %v2927_v60 = vld [vmem:[#allocation5 + $0x3a8] ss:$16 sps:$4 sm:$0xff]  }
  0xbe   :  { %1418 = vmatpush1.bf16.msra.mxu0 %v2858_v59  ;;  %1501 = vmatprep.subr.bf16.mxu1 %v2869_v62  ;;  %v3010_v59 = vld [vmem:[#allocation7 + $0x74] ss:$8 sps:$4 sm:$0xff]  }
  0xbf   :  { %1419 = vmatprep.subr.bf16.mxu0 %v2866_v61  ;;  %v3008_v61 = vld [vmem:[#allocation7 + $0x70] ss:$8 sps:$4 sm:$0xff]   ;;  %v2932_v62 = vld [vmem:[#allocation5 + $0x3cc] ss:$16 sps:$4 sm:$0xff]  }
  0xc1   :  { %1502 = vmatpush1.bf16.msra.mxu1 %v2867_v0  ;;  %v2930_v0 = vld [vmem:[#allocation5 + $0x3c8] ss:$16 sps:$4 sm:$0xff]  }
  0xc2   :  { %1420 = vmatpush1.bf16.msra.mxu0 %v2864_v63  ;;  %1503 = vmatprep.subr.bf16.mxu1 %v2875_v2  ;;  %v3013_v63 = vld [vmem:[#allocation7 + $0x84] ss:$8 sps:$4 sm:$0xff]  }
  0xc3   :  { %1421 = vmatprep.subr.bf16.mxu0 %v2872_v1  ;;  %v3011_v1 = vld [vmem:[#allocation7 + $0x80] ss:$8 sps:$4 sm:$0xff]   ;;  %v2935_v2 = vld [vmem:[#allocation5 + $0x3ec] ss:$16 sps:$4 sm:$0xff]  }
  0xc5   :  { %1504 = vmatpush1.bf16.msra.mxu1 %v2873_v4  ;;  %v2933_v4 = vld [vmem:[#allocation5 + $0x3e8] ss:$16 sps:$4 sm:$0xff]  }
  0xc6   :  { %1422 = vmatpush1.bf16.msra.mxu0 %v2870_v3  ;;  %1505 = vmatprep.subr.bf16.mxu1 %v2881_v8  ;;  %v3016_v3 = vld [vmem:[#allocation7 + $0x94] ss:$8 sps:$4 sm:$0xff]  }
  0xc7   :  { %1423 = vmatprep.subr.bf16.mxu0 %v2878_v5  ;;  %v3014_v5 = vld [vmem:[#allocation7 + $0x90] ss:$8 sps:$4 sm:$0xff]   ;;  %v2938_v8 = vld [vmem:[#allocation5 + $0x40c] ss:$16 sps:$4 sm:$0xff]  }
  0xc9   :  { %1506 = vmatpush1.bf16.msra.mxu1 %v2879_v10  ;;  %v2936_v10 = vld [vmem:[#allocation5 + $0x408] ss:$16 sps:$4 sm:$0xff]  }
  0xca   :  { %1424 = vmatpush1.bf16.msra.mxu0 %v2876_v9  ;;  %1516 = vmatprep.subr.bf16.mxu1 %v2886_v11  ;;  %v3019_v9 = vld [vmem:[#allocation7 + $0xa4] ss:$8 sps:$4 sm:$0xff]  }
  0xcb   :  { %1434 = vmatprep.subr.bf16.mxu0 %v2892_v12  ;;  %v2941_v11 = vld [vmem:[#allocation5 + $0x42c] ss:$16 sps:$4 sm:$0xff]   ;;  %v3017_v12 = vld [vmem:[#allocation7 + $0xa0] ss:$8 sps:$4 sm:$0xff]  }
  0xcc   :  { %1508 = vmatmul.mubr.bf16.vlgmr.msra.gmra.mrb[4].mxu1 %v3327_v6  ;;  %v2900_v6 = vld [vmem:[#allocation5 + $0x288] ss:$16 sps:$4 sm:$0xff]  }
  0xcd   :  { %1426 = vmatmul.mubr.bf16.vlgmr.msra.gmra.mrb[0].mxu0 %v3343_v13  ;;  %1517 = vmatpush1.bf16.msra.mxu1 %v2884_v14  ;;  %v3022_v14 = vld [vmem:[#allocation7 + $0xb4] ss:$8 sps:$4 sm:$0xff]  }
  0xce   :  { %1435 = vmatpush1.bf16.msra.mxu0 %v2890_v15  ;;  %1518 = vmatprep.subr.bf16.mxu1 %v2889_v16  ;;  %v2939_v15 = vld [vmem:[#allocation5 + $0x428] ss:$16 sps:$4 sm:$0xff]   ;;  %v2944_v16 = vld [vmem:[#allocation5 + $0x44c] ss:$16 sps:$4 sm:$0xff]  }
  0xcf   :  { %1466 = vmatprep.mubr.bf16.mxu0 %v3231_v20  ;;  %1548 = vmatprep.mubr.bf16.mxu1 %v3323_v51  ;;  %v2908_v51 = vld [vmem:[#allocation5 + $0x2cc] ss:$16 sps:$4 sm:$0xff]  }
  0xd0   :  { %1598 = vmatprep.subr.bf16.mxu0 %v2983_v17  ;;  %v3020_v17 = vld [vmem:[#allocation7 + $0xb0] ss:$8 sps:$4 sm:$0xff]  }
  0xd1   :  { %1519 = vmatpush1.bf16.msra.mxu1 %v2887_v18  ;;  %v3025_v18 = vld [vmem:[#allocation7 + $0xc4] ss:$8 sps:$4 sm:$0xff]  }
  0xd2   :  { %1520 = vmatprep.subr.bf16.mxu1 %v2895_v19  ;;  %v2942_v19 = vld [vmem:[#allocation5 + $0x448] ss:$16 sps:$4 sm:$0xff]  }
  0xd5   :  { %1521 = vmatpush1.bf16.msra.mxu1 %v2893_v21  ;;  %v3023_v21 = vld [vmem:[#allocation7 + $0xc0] ss:$8 sps:$4 sm:$0xff]  }
  0xd6   :  { %1522 = vmatprep.subr.bf16.mxu1 %v2899_v22  ;;  %v3028_v22 = vld [vmem:[#allocation7 + $0xd4] ss:$8 sps:$4 sm:$0xff]  }
  0xd9   :  { %2539 = vmatmul.mubr.msk.bf16.vlgmr.msra.gmra.mrb[0].mxu0 %vm1307_vm0, %v2896_v23  ;;  %1523 = vmatpush1.bf16.msra.mxu1 %v2897_v24  ;;  %v2948_v24 = vld [vmem:[#allocation5 + $0x488] ss:$16 sps:$4 sm:$0xff]  }
  0xda   :  { %1599 = vmatpush1.bf16.msra.mxu0 %v2981_v25  ;;  %1524 = vmatprep.subr.bf16.mxu1 %v2902_v26  ;;  %v2953_v25 = vld [vmem:[#allocation5 + $0x4ac] ss:$16 sps:$4 sm:$0xff]   ;;  %v2951_v26 = vld [vmem:[#allocation5 + $0x4a8] ss:$16 sps:$4 sm:$0xff]  }
  0xdb   :  { %1630 = vmatprep.mubr.bf16.mxu0 %v3231_v20  ;;  %2043 = vmatprep.subr.bf16.mxu0 %v2989_v32  ;;  %v2947_v20 = vld [vmem:[#allocation5 + $0x46c] ss:$16 sps:$4 sm:$0xff]  }
  0xdc   :  { %v3031_v32 = vld [vmem:[#allocation7 + $0xe4] ss:$8 sps:$4 sm:$0xff]  }
  0xdd   :  { %1525 = vmatpush1.bf16.msra.mxu1 %v2900_v6  ;;  %v2956_v6 = vld [vmem:[#allocation5 + $0x4cc] ss:$16 sps:$4 sm:$0xff]  }
  0xde   :  { %1526 = vmatprep.subr.bf16.mxu1 %v2905_v27  ;;  %v2954_v27 = vld [vmem:[#allocation5 + $0x4c8] ss:$16 sps:$4 sm:$0xff]  }
  0xe1   :  { %2540 = vmatmul.mubr.msk.bf16.vlgmr.msra.gmra.mrb[4].mxu0 %vm1307_vm0, %v2896_v23  ;;  %1527 = vmatpush1.bf16.msra.mxu1 %v2903_v28  ;;  %v2950_v23 = vld [vmem:[#allocation5 + $0x48c] ss:$16 sps:$4 sm:$0xff]  }
  0xe2   :  { %1528 = vmatprep.subr.bf16.mxu1 %v2908_v51  ;;  %2044 = vmatpush1.bf16.msra.mxu0 %v2987_v31  ;;  %v2959_v28 = vld [vmem:[#allocation5 + $0x4ec] ss:$16 sps:$4 sm:$0xff]   ;;  %v2957_v51 = vld [vmem:[#allocation5 + $0x4e8] ss:$16 sps:$4 sm:$0xff]  }
  0xe3   :  { %2045 = vmatprep.subr.bf16.mxu0 %v2992_v33  ;;  %v2965_v31 = vld [vmem:[#allocation5 + $0x52c] ss:$16 sps:$4 sm:$0xff]   ;;  %v3029_v33 = vld [vmem:[#allocation7 + $0xe0] ss:$8 sps:$4 sm:$0xff]  }
  0xe5   :  { %1529 = vmatpush1.bf16.msra.mxu1 %v2906_v29  ;;  %v2962_v29 = vld [vmem:[#allocation5 + $0x50c] ss:$16 sps:$4 sm:$0xff]  }
  0xe6   :  { %1530 = vmatprep.subr.bf16.mxu1 %v2911_v30  ;;  %2046 = vmatpush1.bf16.msra.mxu0 %v2990_v36  ;;  %v2960_v30 = vld [vmem:[#allocation5 + $0x508] ss:$16 sps:$4 sm:$0xff]   ;;  %v2968_v36 = vld [vmem:[#allocation5 + $0x54c] ss:$16 sps:$4 sm:$0xff]  }
  0xe7   :  { %2047 = vmatprep.subr.bf16.mxu0 %v2995_v38  ;;  %v3032_v38 = vld [vmem:[#allocation7 + $0xf0] ss:$8 sps:$4 sm:$0xff]  }
  0xe9   :  { %1531 = vmatpush1.bf16.msra.mxu1 %v2909_v35  ;;  %v2963_v35 = vld [vmem:[#allocation5 + $0x528] ss:$16 sps:$4 sm:$0xff]  }
  0xea   :  { %1532 = vmatprep.subr.bf16.mxu1 %v2914_v37  ;;  %2048 = vmatpush1.bf16.msra.mxu0 %v2993_v40  ;;  %v3034_v37 = vld [vmem:[#allocation7 + $0xf4] ss:$8 sps:$4 sm:$0xff]  }
  0xeb   :  { %2049 = vmatprep.subr.bf16.mxu0 %v2998_v42  ;;  %v2971_v40 = vld [vmem:[#allocation5 + $0x56c] ss:$16 sps:$4 sm:$0xff]   ;;  %v2969_v42 = vld [vmem:[#allocation5 + $0x568] ss:$16 sps:$4 sm:$0xff]  }
  0xed   :  { %1533 = vmatpush1.bf16.msra.mxu1 %v2912_v39  ;;  %v2966_v39 = vld [vmem:[#allocation5 + $0x548] ss:$16 sps:$4 sm:$0xff]  }
  0xee   :  { %1534 = vmatprep.subr.bf16.mxu1 %v2917_v41  ;;  %2050 = vmatpush1.bf16.msra.mxu0 %v2996_v44  ;;  %v3037_v41 = vld [vmem:[#allocation7 + $0x104] ss:$8 sps:$4 sm:$0xff]   ;;  %v2972_v44 = vld [vmem:[#allocation5 + $0x588] ss:$16 sps:$4 sm:$0xff]  }
  0xef   :  { %2051 = vmatprep.subr.bf16.mxu0 %v3001_v46  ;;  %v2975_v46 = vld [vmem:[#allocation5 + $0x5a8] ss:$16 sps:$4 sm:$0xff]  }
  0xf1   :  { %1535 = vmatpush1.bf16.msra.mxu1 %v2915_v43  ;;  %v2974_v43 = vld [vmem:[#allocation5 + $0x58c] ss:$16 sps:$4 sm:$0xff]  }
  0xf2   :  { %1536 = vmatprep.subr.bf16.mxu1 %v2920_v45  ;;  %2052 = vmatpush1.bf16.msra.mxu0 %v2999_v48  ;;  %v2977_v45 = vld [vmem:[#allocation5 + $0x5ac] ss:$16 sps:$4 sm:$0xff]   ;;  %v2978_v48 = vld [vmem:[#allocation5 + $0x5c8] ss:$16 sps:$4 sm:$0xff]  }
  0xf3   :  { %2053 = vmatprep.subr.bf16.mxu0 %v3004_v50  ;;  %v2984_v50 = vld [vmem:[#allocation5 + $0x5e8] ss:$16 sps:$4 sm:$0xff]  }
  0xf5   :  { %1537 = vmatpush1.bf16.msra.mxu1 %v2918_v47  ;;  %v2980_v47 = vld [vmem:[#allocation5 + $0x5cc] ss:$16 sps:$4 sm:$0xff]  }
  0xf6   :  { %1538 = vmatprep.subr.bf16.mxu1 %v2923_v49  ;;  %2054 = vmatpush1.bf16.msra.mxu0 %v3002_v53  ;;  %v2986_v49 = vld [vmem:[#allocation5 + $0x5ec] ss:$16 sps:$4 sm:$0xff]  }
  0xf7   :  { %2055 = vmatprep.subr.bf16.mxu0 %v3007_v55 }
  0xf9   :  { %1539 = vmatpush1.bf16.msra.mxu1 %v2921_v52 }
  0xfa   :  { %1540 = vmatprep.subr.bf16.mxu1 %v2926_v54  ;;  %2056 = vmatpush1.bf16.msra.mxu0 %v3005_v57 }
  0xfb   :  { %2057 = vmatprep.subr.bf16.mxu0 %v3010_v59  ;;  %v3358_v59 = vld [vmem:[%s3402_s2] sm:$0xf] }
  0xfd   :  { %1541 = vmatpush1.bf16.msra.mxu1 %v2924_v56  ;;  %v283_v56 = vlaneseq }
  0xfe   :  { %1542 = vmatprep.subr.bf16.mxu1 %v2929_v58  ;;  %2058 = vmatpush1.bf16.msra.mxu0 %v3008_v61 }
  0xff   :  { %2059 = vmatprep.subr.bf16.mxu0 %v3013_v63  ;;  %v3352_v57 = vshrl.u32 %v283_v56, 7  ;;  %v3083_v63 = vld [vmem:[#allocation8 + $0x40] sm:$0xff]  }
 0x101   :  { %1543 = vmatpush1.bf16.msra.mxu1 %v2927_v60  ;;  %v285_v58 = vsub.s32 0, %v3352_v57  ;;  %v289_v60 = vsub.s32 1, %v3352_v57 }
 0x102   :  { %1544 = vmatprep.subr.bf16.mxu1 %v2932_v62  ;;  %2060 = vmatpush1.bf16.msra.mxu0 %v3011_v1  ;;  %v3085_v1 = vld [vmem:[#allocation8 + $0x48] sm:$0xff]  }
 0x103   :  { %2061 = vmatprep.subr.bf16.mxu0 %v3016_v3  ;;  %v290_v61 = vrot.slane %v3358_v59, %v289_v60 }
 0x105   :  { %1545 = vmatpush1.bf16.msra.mxu1 %v2930_v0  ;;  %v3084_v0 = vld [vmem:[#allocation8] sm:$0xff]  }
 0x106   :  { %1546 = vmatprep.subr.bf16.mxu1 %v2935_v2  ;;  %2062 = vmatpush1.bf16.msra.mxu0 %v3014_v5 }
 0x107   :  { %2063 = vmatprep.subr.bf16.mxu0 %v3019_v9 }
 0x109   :  { %1547 = vmatpush1.bf16.msra.mxu1 %v2933_v4 }
 0x10a   :  { %1557 = vmatprep.subr.bf16.mxu1 %v2938_v8  ;;  %2064 = vmatpush1.bf16.msra.mxu0 %v3017_v12 }
 0x10b   :  { %2065 = vmatprep.subr.bf16.mxu0 %v3022_v14  ;;  %v3087_v14 = vld [vmem:[#allocation8 + $0x50] sm:$0xff]  }
 0x10c   :  { %1549 = vmatmul.mubr.bf16.vlgmr.msra.gmra.mrb[4].mxu1 %v3329_v7  ;;  %v2945_v7 = vld [vmem:[#allocation5 + $0x468] ss:$16 sps:$4 sm:$0xff]  }
 0x10d   :  { %1558 = vmatpush1.bf16.msra.mxu1 %v2936_v10  ;;  %1589 = vmatprep.mubr.bf16.mxu1 %v3338_v34  ;;  %v3026_v34 = vld [vmem:[#allocation7 + $0xd0] ss:$8 sps:$4 sm:$0xff]   ;;  %v3086_v10 = vld [vmem:[#allocation8 + $0x8] sm:$0xff]  }
 0x10e   :  { %1559 = vmatprep.subr.bf16.mxu1 %v2941_v11  ;;  %2066 = vmatpush1.bf16.msra.mxu0 %v3020_v17  ;;  %v3035_v17 = vld [vmem:[#allocation7 + $0x100] ss:$8 sps:$4 sm:$0xff]  }
 0x10f   :  { %2067 = vmatprep.subr.bf16.mxu0 %v3025_v18  ;;  %v3088_v18 = vld [vmem:[#allocation8 + $0x10] sm:$0xff]  }
 0x111   :  { %1560 = vmatpush1.bf16.msra.mxu1 %v2939_v15 }
 0x112   :  { %1561 = vmatprep.subr.bf16.mxu1 %v2944_v16  ;;  %2068 = vmatpush1.bf16.msra.mxu0 %v3023_v21  ;;  %v3089_v21 = vld [vmem:[#allocation8 + $0x58] sm:$0xff]  }
 0x113   :  { %2069 = vmatprep.subr.bf16.mxu0 %v3028_v22 }
 0x115   :  { %1562 = vmatpush1.bf16.msra.mxu1 %v2942_v19 }
 0x116   :  { %1563 = vmatprep.subr.bf16.mxu1 %v2947_v20  ;;  %2070 = vmatpush1.bf16.msra.mxu0 %v3026_v34  ;;  %v3040_v20 = vld [vmem:[#allocation7 + $0x114] ss:$8 sps:$4 sm:$0xff]  }
 0x117   :  { %2071 = vmatprep.subr.bf16.mxu0 %v3031_v32  ;;  %v3049_v32 = vld [vmem:[#allocation7 + $0x144] ss:$8 sps:$4 sm:$0xff]  }
 0x119   :  { %1564 = vmatpush1.bf16.msra.mxu1 %v2945_v7 }
 0x11a   :  { %1565 = vmatprep.subr.bf16.mxu1 %v2950_v23  ;;  %2072 = vmatpush1.bf16.msra.mxu0 %v3029_v33  ;;  %v3038_v23 = vld [vmem:[#allocation7 + $0x110] ss:$8 sps:$4 sm:$0xff]   ;;  %v3047_v33 = vld [vmem:[#allocation7 + $0x140] ss:$8 sps:$4 sm:$0xff]  }
 0x11b   :  { %2073 = vmatprep.subr.bf16.mxu0 %v3034_v37  ;;  %v3055_v37 = vld [vmem:[#allocation7 + $0x164] ss:$8 sps:$4 sm:$0xff]  }
 0x11d   :  { %1566 = vmatpush1.bf16.msra.mxu1 %v2948_v24  ;;  %v3090_v24 = vld [vmem:[#allocation8 + $0x18] sm:$0xff]  }
 0x11e   :  { %1567 = vmatprep.subr.bf16.mxu1 %v2953_v25  ;;  %2074 = vmatpush1.bf16.msra.mxu0 %v3032_v38  ;;  %v3043_v25 = vld [vmem:[#allocation7 + $0x124] ss:$8 sps:$4 sm:$0xff]   ;;  %v3053_v38 = vld [vmem:[#allocation7 + $0x160] ss:$8 sps:$4 sm:$0xff]  }
 0x11f   :  { %2084 = vmatprep.subr.bf16.mxu0 %v3037_v41  ;;  %v3061_v41 = vld [vmem:[#allocation7 + $0x184] ss:$8 sps:$4 sm:$0xff]  }
 0x121   :  { %1568 = vmatpush1.bf16.msra.mxu1 %v2951_v26 }
 0x122   :  { %1569 = vmatprep.subr.bf16.mxu1 %v2956_v6  ;;  %v3091_v6 = vld [vmem:[#allocation8 + $0x60] sm:$0xff]  }
 0x125   :  { %1570 = vmatpush1.bf16.msra.mxu1 %v2954_v27  ;;  %v3041_v27 = vld [vmem:[#allocation7 + $0x120] ss:$8 sps:$4 sm:$0xff]  }
 0x126   :  { %1571 = vmatprep.subr.bf16.mxu1 %v2959_v28  ;;  %v3092_v28 = vld [vmem:[#allocation8 + $0x20] sm:$0xff]  }
 0x129   :  { %1572 = vmatpush1.bf16.msra.mxu1 %v2957_v51  ;;  %v3046_v51 = vld [vmem:[#allocation7 + $0x134] ss:$8 sps:$4 sm:$0xff]  }
 0x12a   :  { %1573 = vmatprep.subr.bf16.mxu1 %v2962_v29  ;;  %v3093_v29 = vld [vmem:[#allocation8 + $0x68] sm:$0xff]  }
 0x12d   :  { %1574 = vmatpush1.bf16.msra.mxu1 %v2960_v30  ;;  %v3044_v30 = vld [vmem:[#allocation7 + $0x130] ss:$8 sps:$4 sm:$0xff]  }
 0x12e   :  { %1575 = vmatprep.subr.bf16.mxu1 %v2965_v31  ;;  %v3094_v31 = vld [vmem:[#allocation8 + $0x28] sm:$0xff]  }
 0x131   :  { %1576 = vmatpush1.bf16.msra.mxu1 %v2963_v35  ;;  %v3052_v35 = vld [vmem:[#allocation7 + $0x154] ss:$8 sps:$4 sm:$0xff]  }
 0x132   :  { %1577 = vmatprep.subr.bf16.mxu1 %v2968_v36  ;;  %v3050_v36 = vld [vmem:[#allocation7 + $0x150] ss:$8 sps:$4 sm:$0xff]  }
 0x135   :  { %1578 = vmatpush1.bf16.msra.mxu1 %v2966_v39  ;;  %v3058_v39 = vld [vmem:[#allocation7 + $0x174] ss:$8 sps:$4 sm:$0xff]  }
 0x136   :  { %1579 = vmatprep.subr.bf16.mxu1 %v2971_v40  ;;  %v3056_v40 = vld [vmem:[#allocation7 + $0x170] ss:$8 sps:$4 sm:$0xff]  }
 0x139   :  { %1580 = vmatpush1.bf16.msra.mxu1 %v2969_v42  ;;  %v3059_v42 = vld [vmem:[#allocation7 + $0x180] ss:$8 sps:$4 sm:$0xff]  }
 0x13a   :  { %1581 = vmatprep.subr.bf16.mxu1 %v2974_v43  ;;  %v3064_v43 = vld [vmem:[#allocation7 + $0x194] ss:$8 sps:$4 sm:$0xff]  }
 0x13d   :  { %1582 = vmatpush1.bf16.msra.mxu1 %v2972_v44  ;;  %v3062_v44 = vld [vmem:[#allocation7 + $0x190] ss:$8 sps:$4 sm:$0xff]  }
 0x13e   :  { %1583 = vmatprep.subr.bf16.mxu1 %v2977_v45  ;;  %v3067_v45 = vld [vmem:[#allocation7 + $0x1a4] ss:$8 sps:$4 sm:$0xff]  }
 0x141   :  { %1584 = vmatpush1.bf16.msra.mxu1 %v2975_v46  ;;  %v3065_v46 = vld [vmem:[#allocation7 + $0x1a0] ss:$8 sps:$4 sm:$0xff]  }
 0x142   :  { %1585 = vmatprep.subr.bf16.mxu1 %v2980_v47  ;;  %v3070_v47 = vld [vmem:[#allocation7 + $0x1b4] ss:$8 sps:$4 sm:$0xff]  }
 0x145   :  { %1586 = vmatpush1.bf16.msra.mxu1 %v2978_v48  ;;  %v3068_v48 = vld [vmem:[#allocation7 + $0x1b0] ss:$8 sps:$4 sm:$0xff]  }
 0x146   :  { %1587 = vmatprep.subr.bf16.mxu1 %v2986_v49  ;;  %v3073_v49 = vld [vmem:[#allocation7 + $0x1c4] ss:$8 sps:$4 sm:$0xff]  }
 0x149   :  { %1588 = vmatpush1.bf16.msra.mxu1 %v2984_v50  ;;  %v3071_v50 = vld [vmem:[#allocation7 + $0x1c0] ss:$8 sps:$4 sm:$0xff]  }
 0x14a   :  { %2622 = vmatprep.subr.bf16.mxu1 %v3083_v63  ;;  %v297_v63 = vsub.s32 3, %v3352_v57 }
 0x14c   :  { %1590 = vmatmul.mubr.bf16.vlgmr.msra.gmra.mrb[4].mxu1 %v3343_v13  ;;  %v286_v13 = vrot.slane %v3358_v59, %v285_v58 }
 0x14d   :  { %2623 = vmatpush3.bf16.msra.mxu1 %v3084_v0 }
 0x14e   :  { %2624 = vmatprep.subr.bf16.mxu1 %v3085_v1  ;;  %v298_v1 = vrot.slane %v3358_v59, %v297_v63 }
 0x151   :  { %2625 = vmatpush3.bf16.msra.mxu1 %v3086_v10 }
 0x152   :  { %2626 = vmatprep.subr.bf16.mxu1 %v3087_v14 }
 0x155   :  { %2627 = vmatpush3.bf16.msra.mxu1 %v3088_v18  ;;  %v3096_v18 = vld [vmem:[#allocation8 + $0x30] sm:$0xff]  }
 0x156   :  { %2628 = vmatprep.subr.bf16.mxu1 %v3089_v21 }
 0x159   :  { %2629 = vmatpush3.bf16.msra.mxu1 %v3090_v24 }
 0x15a   :  { %2630 = vmatprep.subr.bf16.mxu1 %v3091_v6 }
 0x15d   :  { %2631 = vmatpush3.bf16.msra.mxu1 %v3092_v28 }
 0x15e   :  { %2632 = vmatprep.subr.bf16.mxu1 %v3093_v29  ;;  %v2305_v29 = vand.u32 127, %v283_v56 }
 0x15f   :  { %v1345_v52 = vpop.f32.mrb[0].mxu1 }
 0x160   :  { %v1347_v53 = vpop.f32.mrb[1].mxu1  ;;  %v1346_v62 = vadd.f32 %v1345_v52, %v286_v13  ;;  %v3076_v52 = vld [vmem:[#allocation7 + $0x1d4] ss:$8 sps:$4 sm:$0xff]   ;;  %vm2306_vm1 = vcmp.lt.s32.totalorder %v2305_v29, 10 }
 0x161   :  { %v1349_v54 = vpop.f32.mrb[2].mxu1  ;;  %v1348_v2 = vadd.f32 %v1347_v53, %v290_v61  ;;  %2633 = vmatpush3.bf16.msra.mxu1 %v3094_v31  ;;  %v3074_v53 = vld [vmem:[#allocation7 + $0x1d0] ss:$8 sps:$4 sm:$0xff]   ;;  %v3082_v13 = vld [vmem:[#allocation7 + $0x1f4] ss:$8 sps:$4 sm:$0xff]  }
 0x162   :  { %v1350_v55 = vpop.f32.mrb[3].mxu1  ;;  %v3079_v54 = vld [vmem:[#allocation7 + $0x1e4] ss:$8 sps:$4 sm:$0xff]   ;;  %v3080_v61 = vld [vmem:[#allocation7 + $0x1f0] ss:$8 sps:$4 sm:$0xff]  }
 0x163   :  { %v3077_v55 = vld [vmem:[#allocation7 + $0x1e0] ss:$8 sps:$4 sm:$0xff]  }
 0x1ac   :  { %v1468_v3 = vpop.f32.mrb[0].mxu0 }
 0x1ad   :  { %v2645_v4 = vadd.f32 %v1468_v3, %v1346_v62  ;;  %v1470_v5 = vpop.f32.mrb[1].mxu0  ;;  %v293_v62 = vsub.s32 2, %v3352_v57  ;;  %v2605_v57 = vld [vmem:[%s3406_s6] ss:$0 sm:$0xff]  ;;  %s3191_s6 = scalar_lea.vmem %s2326_s9, 128 }
 0x1ae   :  { %v2647_v8 = vadd.f32 %v1470_v5, %v1348_v2  ;;  %v1472_v9 = vpop.f32.mrb[2].mxu0  ;;  %p3192_p4 = scmp.ne.s32.totalorder %s2326_s9, %s3191_s6  ;;  %p3197_p6 = scmp.lt.s32.totalorder %s3191_s6, %s3191_s6 }
 0x1af   :  { %v1639_v11 = vmax.f32 %v2645_v4, 0.0  ;;  %v1473_v12 = vpop.f32.mrb[3].mxu0  ;;  %v294_v0 = vrot.slane %v3358_v59, %v293_v62  ;;  %v3097_v59 = vld [vmem:[#allocation8 + $0x78] sm:$0xff]  }
 0x1b0   :  { %v1640_v15 = vmax.f32 %v2647_v8, 0.0  ;;  %p3198_p7 = por %p3197_p6, %p3196_p5 }
 0x1b1   :  { %v1643_v19 = vpack.c.bf16 %v1639_v11, %v1639_v11 }
 0x1b2   :  { %v1644_v16 = vpack.c.bf16 %v1640_v15, %v1640_v15  ;;  %p3199_p8 = pnand %p3198_p7, %p3192_p4 }
 0x1b4   :  { %2075 = vmatprep.mubr.bf16.mxu0 %v1644_v16  ;;  %v3367_v22 = vpop.f32.mrb[4].mxu0 }
 0x1b5   :  { %2076 = vmatmul.mubr.bf16.vlgmr.msra.gmra.mrb[8].mxu0 %v1643_v19  ;;  %v3369_v7 = vpop.f32.mrb[5].mxu0  ;;  %v3098_v19 = vld [vmem:[#allocation8 + $0x38] sm:$0xff]  }
 0x1b6   :  { %2085 = vmatpush1.bf16.msra.mxu0 %v3035_v17  ;;  %v1636_v34 = vpop.f32.mrb[6].mxu0  ;;  %v3095_v17 = vld [vmem:[#allocation8 + $0x70] sm:$0xff]  }
 0x1b7   :  { %2086 = vmatprep.subr.bf16.mxu0 %v3040_v20  ;;  %v1637_v26 = vpop.f32.mrb[7].mxu0  ;;  %2634 = vmatprep.subr.bf16.mxu1 %v3095_v17  ;;  %v1711_v20 = vld [vmem:[%s3404_s4] sm:$0x3] }
 0x1b8   :  { %2635 = vmatpush3.bf16.msra.mxu1 %v3096_v18  ;;  %v1716_v21 = vrot.slane %v1711_v20, %v285_v58 }
 0x1b9   :  { %2636 = vmatprep.subr.bf16.mxu1 %v3097_v59 }
 0x1ba   :  { %2087 = vmatpush1.bf16.msra.mxu0 %v3038_v23 }
 0x1bb   :  { %2088 = vmatprep.subr.bf16.mxu0 %v3043_v25 }
 0x1bc   :  { %2637 = vmatpush3.bf16.msra.mxu1 %v3098_v19 }
 0x1be   :  { %2089 = vmatpush1.bf16.msra.mxu0 %v3041_v27 }
 0x1bf   :  { %2090 = vmatprep.subr.bf16.mxu0 %v3046_v51 }
 0x1c2   :  { %2091 = vmatpush1.bf16.msra.mxu0 %v3044_v30 }
 0x1c3   :  { %2092 = vmatprep.subr.bf16.mxu0 %v3049_v32 }
 0x1c6   :  { %2093 = vmatpush1.bf16.msra.mxu0 %v3047_v33 }
 0x1c7   :  { %2094 = vmatprep.subr.bf16.mxu0 %v3052_v35 }
 0x1ca   :  { %2095 = vmatpush1.bf16.msra.mxu0 %v3050_v36 }
 0x1cb   :  { %2096 = vmatprep.subr.bf16.mxu0 %v3055_v37 }
 0x1ce   :  { %2097 = vmatpush1.bf16.msra.mxu0 %v3053_v38 }
 0x1cf   :  { %2098 = vmatprep.subr.bf16.mxu0 %v3058_v39 }
 0x1d2   :  { %2099 = vmatpush1.bf16.msra.mxu0 %v3056_v40 }
 0x1d3   :  { %2100 = vmatprep.subr.bf16.mxu0 %v3061_v41 }
 0x1d6   :  { %2101 = vmatpush1.bf16.msra.mxu0 %v3059_v42 }
 0x1d7   :  { %2102 = vmatprep.subr.bf16.mxu0 %v3064_v43 }
 0x1da   :  { %2103 = vmatpush1.bf16.msra.mxu0 %v3062_v44 }
 0x1db   :  { %2104 = vmatprep.subr.bf16.mxu0 %v3067_v45 }
 0x1de   :  { %2105 = vmatpush1.bf16.msra.mxu0 %v3065_v46 }
 0x1df   :  { %2106 = vmatprep.subr.bf16.mxu0 %v3070_v47 }
 0x1e2   :  { %2107 = vmatpush1.bf16.msra.mxu0 %v3068_v48 }
 0x1e3   :  { %2108 = vmatprep.subr.bf16.mxu0 %v3073_v49 }
 0x1e6   :  { %2109 = vmatpush1.bf16.msra.mxu0 %v3071_v50 }
 0x1e7   :  { %2110 = vmatprep.subr.bf16.mxu0 %v3076_v52 }
 0x1ea   :  { %2111 = vmatpush1.bf16.msra.mxu0 %v3074_v53 }
 0x1eb   :  { %2112 = vmatprep.subr.bf16.mxu0 %v3079_v54 }
 0x1ee   :  { %2113 = vmatpush1.bf16.msra.mxu0 %v3077_v55 }
 0x1ef   :  { %2114 = vmatprep.subr.bf16.mxu0 %v3082_v13 }
 0x1f2   :  { %2115 = vmatpush1.bf16.msra.mxu0 %v3080_v61 }
 0x21f   :  { %v1591_v2 = vpop.f32.mrb[4].mxu1 }
 0x220   :  { %v2648_v3 = vadd.f32 %v1591_v2, %v294_v0  ;;  %v1593_v4 = vpop.f32.mrb[5].mxu1 }
 0x221   :  { %v2650_v5 = vadd.f32 %v1593_v4, %v298_v1  ;;  %v1595_v8 = vpop.f32.mrb[6].mxu1 }
 0x222   :  { %v2649_v9 = vadd.f32 %v2648_v3, %v3367_v22  ;;  %v1596_v10 = vpop.f32.mrb[7].mxu1  ;;  %v1720_v22 = vrot.slane %v1711_v20, %v289_v60 }
 0x223   :  { %v2651_v11 = vadd.f32 %v2650_v5, %v3369_v7 }
 0x224   :  { %v1641_v12 = vmax.f32 %v2649_v9, 0.0 }
 0x225   :  { %v1642_v14 = vmax.f32 %v2651_v11, 0.0 }
 0x226   :  { %v1645_v16 = vpack.c.bf16 %v1641_v12, %v1641_v12 }
 0x227   :  { %v1646_v15 = vpack.c.bf16 %v1642_v14, %v1642_v14 }
 0x229   :  { %2116 = vmatprep.mubr.bf16.mxu0 %v1646_v15 }
 0x22a   :  { %2117 = vmatmul.mubr.bf16.vlgmr.msra.gmra.mrb[8].mxu0 %v1645_v16 }
 0x2fd   :  { %v2118_v7 = vpop.f32.mrb[8].mxu0 }
 0x2fe   :  { %v2652_v23 = vadd.f32 %v2118_v7, %v1716_v21  ;;  %v2120_v34 = vpop.f32.mrb[9].mxu0 }
 0x2ff   :  { %v2653_v24 = vadd.f32 %v2120_v34, %v1720_v22  ;;  %v2122_v25 = vpop.f32.mrb[10].mxu0 }
 0x300   :  { %v2125_v26 = vmax.f32 %v2652_v23, 0.0  ;;  %v2123_v6 = vpop.f32.mrb[11].mxu0 }
 0x301   :  { %v2126_v27 = vmax.f32 %v2653_v24, 0.0 }
 0x302   :  { %v2127_v51 = vpack.c.bf16 %v2125_v26, %v2125_v26 }
 0x303   :  { %v2128_v28 = vpack.c.bf16 %v2126_v27, %v2126_v27 }
 0x305   :  { %2296 = vmatprep.mubr.bf16.mxu1 %v2128_v28 }
 0x306   :  { %2297 = vmatmul.mubr.bf16.vlgmr.msra.gmra.mrb[8].mxu1 %v2127_v51 }
 0x3d9   :  { %v2638_v30 = vpop.f32.mrb[8].mxu1 }
 0x3da   :  { %v2639_v31 = vpop.f32.mrb[9].mxu1 }
 0x3db   :  { %v2640_v58 = vadd.f32 %v2639_v31, %v2638_v30  ;;  %v2641_v60 = vpop.f32.mrb[10].mxu1 }
 0x3dc   :  { %v2642_v32 = vpop.f32.mrb[11].mxu1 }
 0x3dd   :  { %v2299_v33 = vadd.f32 %v2640_v58, %v2605_v57 }
 0x3df   :  { %v2307_v35 = vsel %vm2306_vm1, %v2299_v33, -1e+30 }
 0x3e0   :  { %2308 = vmax.xlane.f32.xlu0 %v2307_v35 }
 0x46d   :  { %v2309_v36 = vpop.xlane.xlu0 %2308 }
 0x46e   :  { %v2310_v37 = vsub.f32 %v2307_v35, %v2309_v36 }
 0x470   :  { %v2311_v38 = vmul.f32 1.442695, %v2310_v37 }
 0x472   :  { %3099 = vpow2.f32 %v2311_v38 }
 0x47c   :  { %v3100_v39 = vpop.eup %3099 }
 0x47d   :  { %2313 = vadd.xlane.f32.xlu0 %v3100_v39 }
 0x50a   :  { %v2314_v56 = vpop.xlane.xlu0 %2313 }
 0x50b   :  { %3101 = vlog2.f32 %v2314_v56 }
 0x515   :  { %v3102_v40 = vpop.eup %3101 }
 0x516   :  { %v2316_v41 = vmul.f32 0.6931472, %v3102_v40 }
 0x518   :  { %v2317_v42 = vsub.f32 %v2310_v37, %v2316_v41 }
 0x51a   :  { %2318 = vst [vmem:[#allocation10] sm:$0xff] %v2317_v42 }
 0x51b   :  { %3202 = shalt.err (!%p3199_p8)
}
 0x51c   :  { %s3203_s12 = scalar_lea.hbm %s3407_s7, 128 }
 0x51d   :  { %p3204_p9 = scmp.ne.s32.totalorder %s3407_s7, %s3203_s12  ;;  %p3207_p10 = scmp.lt.u32.totalorder %s3203_s12, %s3407_s7 }
 0x51f   :  { %p3209_p11 = pnand %p3207_p10, %p3204_p9 }
 0x521   :  { %3212 = shalt.err (!%p3209_p11)
}
 0x522   :  { %2328 = dma.vmem_to_hbm [thread:$0]  %s2326_s9, 128, %s3407_s7, [#allocation4]  }
 0x523   :  { %3219 = dma.done.wait [#allocation4], 128  }
 0x524   :  { %3220 = vsyncadd [#allocation4], 4294967168 }
 0x525   :  { %2332 = vsyncpa [#allocation3], 1 }
 0x526   :  { %2333 = vsyncpa [#allocation6], 1 }
 0x527   :  { %2334 = vsyncpa [#allocation9], 1 }
 0x528   :  { %2335 = vsyncpa [#allocation4], 1 }

</bundles_post_ra>
